<compile_context>
chip_gen: v7x
topology: tpu7x:2x2x1
jax: 0.10.0
libtpu: 0.0.40
codegen_flags: <defaults>
</compile_context>

<pallas_src>
import functools

import jax
import jax.numpy as jnp
from jax import lax
from jax.experimental import pallas as pl
from jax.experimental.pallas import tpu as pltpu


def _dsconv_kernel(x_ref, dw_ref, pw_ref, pb_ref, o_ref, *,
                   K, stride, dilation, TH, Wout, in_rows, Cin, Cout):
    """One (batch, h-tile) grid step.

    x_ref : (1, Cin, Hpad, Wpad) VMEM  padded NCHW input (resident per batch)
    dw_ref: (K*K, Cin)           SMEM  depthwise taps
    pw_ref: (Cin, Cout)          SMEM  pointwise (1x1) weights
    pb_ref: (1, Cout)            SMEM  pointwise bias (+ folded depthwise bias)
    o_ref : (1, Cout, TH, Wout)  VMEM  one row-block of the output
    """
    t = pl.program_id(1)
    row0 = pl.multiple_of(t * (TH * stride), TH * stride)

    # Input window for this row-block: (Cin, in_rows, Wpad); W stays on lanes.
    xw = x_ref[0, :, pl.ds(row0, in_rows), :]

    # ---- depthwise KxK (VPU): per-channel sum of K*K shifted windows --------
    planes = []
    for c in range(Cin):
        xc = xw[c]                                   # (in_rows, Wpad)
        p = None
        for kh in range(K):
            for kw in range(K):
                patch = lax.slice(
                    xc,
                    (kh * dilation, kw * dilation),
                    (kh * dilation + (TH - 1) * stride + 1,
                     kw * dilation + (Wout - 1) * stride + 1),
                    (stride, stride)).astype(jnp.float32)
                term = patch * dw_ref[kh * K + kw, c]   # SMEM scalar splat
                p = term if p is None else p + term
        planes.append(p)                             # (TH, Wout) f32

    # ---- pointwise 1x1 (VPU): Cin scaled adds per output channel ------------
    for co in range(Cout):
        y = planes[0] * pw_ref[0, co]
        for ci in range(1, Cin):
            y = y + planes[ci] * pw_ref[ci, co]
        o_ref[0, co] = (y + pb_ref[0, co]).astype(o_ref.dtype)


def depthwise_separable_conv2d(x, dw, db, pw, pb, *, kernel_size=3, stride=1,
                               padding=0, dilation=1, h_tile=16):
    """Matches nn.Conv2d(nin, nin, k, groups=nin) -> nn.Conv2d(nin, nout, 1)."""
    # TODO(synk): depth_multiplier > 1 not implemented (module default is 1).
    n, cin, h, w = x.shape
    cout = pw.shape[1]
    k = kernel_size

    hp = h + 2 * padding
    wp = w + 2 * padding
    hout = (hp - dilation * (k - 1) - 1) // stride + 1
    wout = (wp - dilation * (k - 1) - 1) // stride + 1

    # Output-row tiling (second parallel grid axis). Single tile when the whole
    # output height fits (no ragged tile, no extra padding, fewer grid steps);
    # otherwise a sublane-aligned (multiple-of-8) tile so the output BlockSpec
    # satisfies the (8, 128) block rule.
    if hout <= h_tile:
        th = hout
    else:
        th = max(8, (h_tile // 8) * 8)
    n_ht = pl.cdiv(hout, th)
    hout_pad = n_ht * th                              # grid covers this; extra sliced off
    in_rows = (th - 1) * stride + dilation * (k - 1) + 1
    hp_needed = (hout_pad - 1) * stride + dilation * (k - 1) + 1

    # Zero padding: the conv's own padding plus a few bottom rows so the ragged
    # last H tile never reads out of bounds. Skipped when not needed.
    pad_h_hi = padding + max(0, hp_needed - hp)
    if padding or pad_h_hi:
        x = jnp.pad(x, ((0, 0), (0, 0), (padding, pad_h_hi), (padding, padding)))
    hpad, wpad = x.shape[2], x.shape[3]

    # Weight-only packing (tiny, done once): taps as (K*K, Cin); fold depthwise
    # bias into the pointwise bias.
    dw_p = dw.reshape(k * k, cin).astype(jnp.float32)
    pw_p = pw.astype(jnp.float32)
    pb_eff = (pb.astype(jnp.float32)
              + db.astype(jnp.float32) @ pw.astype(jnp.float32)).reshape(1, cout)

    kernel = functools.partial(_dsconv_kernel, K=k, stride=stride,
                               dilation=dilation, TH=th, Wout=wout,
                               in_rows=in_rows, Cin=cin, Cout=cout)

    out = pl.pallas_call(
        kernel,
        out_shape=jax.ShapeDtypeStruct((n, cout, hout_pad, wout), x.dtype),
        grid_spec=pltpu.PrefetchScalarGridSpec(
            num_scalar_prefetch=0,
            grid=(n, n_ht),
            in_specs=[
                pl.BlockSpec((1, cin, hpad, wpad), lambda b, t: (b, 0, 0, 0)),
                pl.BlockSpec(memory_space=pltpu.MemorySpace.SMEM),  # dw (K*K,Cin)
                pl.BlockSpec(memory_space=pltpu.MemorySpace.SMEM),  # pw (Cin,Cout)
                pl.BlockSpec(memory_space=pltpu.MemorySpace.SMEM),  # pb (1,Cout)
            ],
            out_specs=pl.BlockSpec((1, cout, th, wout),
                                   lambda b, t: (b, 0, t, 0)),
        ),
        compiler_params=pltpu.CompilerParams(
            dimension_semantics=("parallel", "parallel"),
            vmem_limit_bytes=32 * 1024 * 1024),
    )(x, dw_p, pw_p, pb_eff)

    if hout_pad != hout:
        out = out[:, :, :hout, :]
    return out


def _reference(x_nchw, dw, db, pw, pb, *, stride=1, padding=0, dilation=1):
    """Pure-JAX reference (lax convolutions) with PyTorch semantics."""
    cin = dw.shape[-1]
    dw_oihw = jnp.transpose(dw, (2, 0, 1))[:, None, :, :]      # (Cin,1,K,K)
    y = lax.conv_general_dilated(
        x_nchw, dw_oihw, (stride, stride),
        [(padding, padding), (padding, padding)],
        rhs_dilation=(dilation, dilation),
        dimension_numbers=("NCHW", "OIHW", "NCHW"),
        feature_group_count=cin)
    y = y + db[None, :, None, None]
    pw_oihw = jnp.transpose(pw, (1, 0))[:, :, None, None]      # (Cout,Cin,1,1)
    z = lax.conv_general_dilated(
        y, pw_oihw, (1, 1), [(0, 0), (0, 0)],
        dimension_numbers=("NCHW", "OIHW", "NCHW"))
    return z + pb[None, :, None, None]


if __name__ == "__main__":
    # Module config: DepthwiseSeparableConv2d(nin=4, nout=8, kernel_size=3,
    #                                         stride=1, padding=0, dilation=1)
    nin, nout, k = 4, 8, 3
    batch, spatial = 2, 16

    key = jax.random.PRNGKey(0)
    kx, kdw, kdb, kpw, kpb = jax.random.split(key, 5)

    x = jax.random.normal(kx, (batch, nin, spatial, spatial), jnp.float32)

    # PyTorch-style uniform init bounds (deterministic, synthetic weights).
    dw_bound = 1.0 / (1 * k * k) ** 0.5      # depthwise fan_in = (nin/groups)*k*k
    pw_bound = 1.0 / (nin * 1 * 1) ** 0.5    # pointwise fan_in = nin
    dw = jax.random.uniform(kdw, (k, k, nin), jnp.float32, -dw_bound, dw_bound)
    db = jax.random.uniform(kdb, (nin,), jnp.float32, -dw_bound, dw_bound)
    pw = jax.random.uniform(kpw, (nin, nout), jnp.float32, -pw_bound, pw_bound)
    pb = jax.random.uniform(kpb, (nout,), jnp.float32, -pw_bound, pw_bound)

    out = depthwise_separable_conv2d(x, dw, db, pw, pb,
                                     kernel_size=k, stride=1, padding=0,
                                     dilation=1)
    out = jax.block_until_ready(out)

    ref = _reference(x, dw, db, pw, pb, stride=1, padding=0, dilation=1)
    assert out.shape == (batch, nout, spatial - k + 1, spatial - k + 1), out.shape
    assert jnp.allclose(out, ref, rtol=1e-4, atol=1e-4), float(
        jnp.max(jnp.abs(out - ref)))

    print("KERNEL_OK")
</pallas_src>

<mosaic_0001>
module attributes {stable_mosaic.version = 11 : i64} {
  func.func @_dsconv_kernel(%arg0: i32, %arg1: i32, %arg2: memref<1x4x16x16xf32, #tpu.memory_space<vmem>>, %arg3: memref<9x4xf32, #tpu.memory_space<smem>>, %arg4: memref<4x8xf32, #tpu.memory_space<smem>>, %arg5: memref<1x8xf32, #tpu.memory_space<smem>>, %arg6: memref<1x8x14x14xf32, #tpu.memory_space<vmem>>) attributes {dimension_semantics = [#tpu.dimension_semantics<parallel>, #tpu.dimension_semantics<parallel>], iteration_bounds = array<i64: 2, 1>, scalar_prefetch = 0 : i64, scratch_operands = 0 : i64, tpu.core_type = #tpu.core_type<tc>, window_params = [{transform_indices = @transform_0, window_bounds = array<i64: 1, 4, 16, 16>}, {transform_indices = @transform_1, window_bounds = array<i64: 9, 4>}, {transform_indices = @transform_2, window_bounds = array<i64: 4, 8>}, {transform_indices = @transform_3, window_bounds = array<i64: 1, 8>}, {transform_indices = @transform_4, window_bounds = array<i64: 1, 8, 14, 14>}]} {
    %c14_i32 = arith.constant 14 : i32
    %0 = arith.muli %arg1, %c14_i32 : i32
    %1 = tpu.assume_multiple %0, 14 : i32
    %c0 = arith.constant 0 : index
    %c0_0 = arith.constant 0 : index
    %2 = arith.index_cast %1 : i32 to index
    %c0_1 = arith.constant 0 : index
    %3 = vector.load %arg2[%c0, %c0_0, %2, %c0_1] : memref<1x4x16x16xf32, #tpu.memory_space<vmem>>, vector<1x4x16x16xf32>
    %4 = vector.shape_cast %3 : vector<1x4x16x16xf32> to vector<4x16x16xf32>
    %5 = vector.extract_strided_slice %4 {offsets = [0, 0, 0], sizes = [1, 16, 16], strides = [1, 1, 1]} : vector<4x16x16xf32> to vector<1x16x16xf32>
    %6 = vector.shape_cast %5 : vector<1x16x16xf32> to vector<16x16xf32>
    %7 = vector.extract_strided_slice %6 {offsets = [0, 0], sizes = [14, 14], strides = [1, 1]} : vector<16x16xf32> to vector<14x14xf32>
    %c0_2 = arith.constant 0 : index
    %c0_3 = arith.constant 0 : index
    %8 = memref.load %arg3[%c0_2, %c0_3] : memref<9x4xf32, #tpu.memory_space<smem>>
    %9 = vector.broadcast %8 : f32 to vector<14x14xf32>
    %10 = arith.mulf %7, %9 : vector<14x14xf32>
    %11 = vector.extract_strided_slice %6 {offsets = [0, 1], sizes = [14, 14], strides = [1, 1]} : vector<16x16xf32> to vector<14x14xf32>
    %c1 = arith.constant 1 : index
    %c0_4 = arith.constant 0 : index
    %12 = memref.load %arg3[%c1, %c0_4] : memref<9x4xf32, #tpu.memory_space<smem>>
    %13 = vector.broadcast %12 : f32 to vector<14x14xf32>
    %14 = arith.mulf %11, %13 : vector<14x14xf32>
    %15 = arith.addf %10, %14 : vector<14x14xf32>
    %16 = vector.extract_strided_slice %6 {offsets = [0, 2], sizes = [14, 14], strides = [1, 1]} : vector<16x16xf32> to vector<14x14xf32>
    %c2 = arith.constant 2 : index
    %c0_5 = arith.constant 0 : index
    %17 = memref.load %arg3[%c2, %c0_5] : memref<9x4xf32, #tpu.memory_space<smem>>
    %18 = vector.broadcast %17 : f32 to vector<14x14xf32>
    %19 = arith.mulf %16, %18 : vector<14x14xf32>
    %20 = arith.addf %15, %19 : vector<14x14xf32>
    %21 = vector.extract_strided_slice %6 {offsets = [1, 0], sizes = [14, 14], strides = [1, 1]} : vector<16x16xf32> to vector<14x14xf32>
    %c3 = arith.constant 3 : index
    %c0_6 = arith.constant 0 : index
    %22 = memref.load %arg3[%c3, %c0_6] : memref<9x4xf32, #tpu.memory_space<smem>>
    %23 = vector.broadcast %22 : f32 to vector<14x14xf32>
    %24 = arith.mulf %21, %23 : vector<14x14xf32>
    %25 = arith.addf %20, %24 : vector<14x14xf32>
    %26 = vector.extract_strided_slice %6 {offsets = [1, 1], sizes = [14, 14], strides = [1, 1]} : vector<16x16xf32> to vector<14x14xf32>
    %c4 = arith.constant 4 : index
    %c0_7 = arith.constant 0 : index
    %27 = memref.load %arg3[%c4, %c0_7] : memref<9x4xf32, #tpu.memory_space<smem>>
    %28 = vector.broadcast %27 : f32 to vector<14x14xf32>
    %29 = arith.mulf %26, %28 : vector<14x14xf32>
    %30 = arith.addf %25, %29 : vector<14x14xf32>
    %31 = vector.extract_strided_slice %6 {offsets = [1, 2], sizes = [14, 14], strides = [1, 1]} : vector<16x16xf32> to vector<14x14xf32>
    %c5 = arith.constant 5 : index
    %c0_8 = arith.constant 0 : index
    %32 = memref.load %arg3[%c5, %c0_8] : memref<9x4xf32, #tpu.memory_space<smem>>
    %33 = vector.broadcast %32 : f32 to vector<14x14xf32>
    %34 = arith.mulf %31, %33 : vector<14x14xf32>
    %35 = arith.addf %30, %34 : vector<14x14xf32>
    %36 = vector.extract_strided_slice %6 {offsets = [2, 0], sizes = [14, 14], strides = [1, 1]} : vector<16x16xf32> to vector<14x14xf32>
    %c6 = arith.constant 6 : index
    %c0_9 = arith.constant 0 : index
    %37 = memref.load %arg3[%c6, %c0_9] : memref<9x4xf32, #tpu.memory_space<smem>>
    %38 = vector.broadcast %37 : f32 to vector<14x14xf32>
    %39 = arith.mulf %36, %38 : vector<14x14xf32>
    %40 = arith.addf %35, %39 : vector<14x14xf32>
    %41 = vector.extract_strided_slice %6 {offsets = [2, 1], sizes = [14, 14], strides = [1, 1]} : vector<16x16xf32> to vector<14x14xf32>
    %c7 = arith.constant 7 : index
    %c0_10 = arith.constant 0 : index
    %42 = memref.load %arg3[%c7, %c0_10] : memref<9x4xf32, #tpu.memory_space<smem>>
    %43 = vector.broadcast %42 : f32 to vector<14x14xf32>
    %44 = arith.mulf %41, %43 : vector<14x14xf32>
    %45 = arith.addf %40, %44 : vector<14x14xf32>
    %46 = vector.extract_strided_slice %6 {offsets = [2, 2], sizes = [14, 14], strides = [1, 1]} : vector<16x16xf32> to vector<14x14xf32>
    %c8 = arith.constant 8 : index
    %c0_11 = arith.constant 0 : index
    %47 = memref.load %arg3[%c8, %c0_11] : memref<9x4xf32, #tpu.memory_space<smem>>
    %48 = vector.broadcast %47 : f32 to vector<14x14xf32>
    %49 = arith.mulf %46, %48 : vector<14x14xf32>
    %50 = arith.addf %45, %49 : vector<14x14xf32>
    %51 = vector.extract_strided_slice %4 {offsets = [1, 0, 0], sizes = [1, 16, 16], strides = [1, 1, 1]} : vector<4x16x16xf32> to vector<1x16x16xf32>
    %52 = vector.shape_cast %51 : vector<1x16x16xf32> to vector<16x16xf32>
    %53 = vector.extract_strided_slice %52 {offsets = [0, 0], sizes = [14, 14], strides = [1, 1]} : vector<16x16xf32> to vector<14x14xf32>
    %c0_12 = arith.constant 0 : index
    %c1_13 = arith.constant 1 : index
    %54 = memref.load %arg3[%c0_12, %c1_13] : memref<9x4xf32, #tpu.memory_space<smem>>
    %55 = vector.broadcast %54 : f32 to vector<14x14xf32>
    %56 = arith.mulf %53, %55 : vector<14x14xf32>
    %57 = vector.extract_strided_slice %52 {offsets = [0, 1], sizes = [14, 14], strides = [1, 1]} : vector<16x16xf32> to vector<14x14xf32>
    %c1_14 = arith.constant 1 : index
    %c1_15 = arith.constant 1 : index
    %58 = memref.load %arg3[%c1_14, %c1_15] : memref<9x4xf32, #tpu.memory_space<smem>>
    %59 = vector.broadcast %58 : f32 to vector<14x14xf32>
    %60 = arith.mulf %57, %59 : vector<14x14xf32>
    %61 = arith.addf %56, %60 : vector<14x14xf32>
    %62 = vector.extract_strided_slice %52 {offsets = [0, 2], sizes = [14, 14], strides = [1, 1]} : vector<16x16xf32> to vector<14x14xf32>
    %c2_16 = arith.constant 2 : index
    %c1_17 = arith.constant 1 : index
    %63 = memref.load %arg3[%c2_16, %c1_17] : memref<9x4xf32, #tpu.memory_space<smem>>
    %64 = vector.broadcast %63 : f32 to vector<14x14xf32>
    %65 = arith.mulf %62, %64 : vector<14x14xf32>
    %66 = arith.addf %61, %65 : vector<14x14xf32>
    %67 = vector.extract_strided_slice %52 {offsets = [1, 0], sizes = [14, 14], strides = [1, 1]} : vector<16x16xf32> to vector<14x14xf32>
    %c3_18 = arith.constant 3 : index
    %c1_19 = arith.constant 1 : index
    %68 = memref.load %arg3[%c3_18, %c1_19] : memref<9x4xf32, #tpu.memory_space<smem>>
    %69 = vector.broadcast %68 : f32 to vector<14x14xf32>
    %70 = arith.mulf %67, %69 : vector<14x14xf32>
    %71 = arith.addf %66, %70 : vector<14x14xf32>
    %72 = vector.extract_strided_slice %52 {offsets = [1, 1], sizes = [14, 14], strides = [1, 1]} : vector<16x16xf32> to vector<14x14xf32>
    %c4_20 = arith.constant 4 : index
    %c1_21 = arith.constant 1 : index
    %73 = memref.load %arg3[%c4_20, %c1_21] : memref<9x4xf32, #tpu.memory_space<smem>>
    %74 = vector.broadcast %73 : f32 to vector<14x14xf32>
    %75 = arith.mulf %72, %74 : vector<14x14xf32>
    %76 = arith.addf %71, %75 : vector<14x14xf32>
    %77 = vector.extract_strided_slice %52 {offsets = [1, 2], sizes = [14, 14], strides = [1, 1]} : vector<16x16xf32> to vector<14x14xf32>
    %c5_22 = arith.constant 5 : index
    %c1_23 = arith.constant 1 : index
    %78 = memref.load %arg3[%c5_22, %c1_23] : memref<9x4xf32, #tpu.memory_space<smem>>
    %79 = vector.broadcast %78 : f32 to vector<14x14xf32>
    %80 = arith.mulf %77, %79 : vector<14x14xf32>
    %81 = arith.addf %76, %80 : vector<14x14xf32>
    %82 = vector.extract_strided_slice %52 {offsets = [2, 0], sizes = [14, 14], strides = [1, 1]} : vector<16x16xf32> to vector<14x14xf32>
    %c6_24 = arith.constant 6 : index
    %c1_25 = arith.constant 1 : index
    %83 = memref.load %arg3[%c6_24, %c1_25] : memref<9x4xf32, #tpu.memory_space<smem>>
    %84 = vector.broadcast %83 : f32 to vector<14x14xf32>
    %85 = arith.mulf %82, %84 : vector<14x14xf32>
    %86 = arith.addf %81, %85 : vector<14x14xf32>
    %87 = vector.extract_strided_slice %52 {offsets = [2, 1], sizes = [14, 14], strides = [1, 1]} : vector<16x16xf32> to vector<14x14xf32>
    %c7_26 = arith.constant 7 : index
    %c1_27 = arith.constant 1 : index
    %88 = memref.load %arg3[%c7_26, %c1_27] : memref<9x4xf32, #tpu.memory_space<smem>>
    %89 = vector.broadcast %88 : f32 to vector<14x14xf32>
    %90 = arith.mulf %87, %89 : vector<14x14xf32>
    %91 = arith.addf %86, %90 : vector<14x14xf32>
    %92 = vector.extract_strided_slice %52 {offsets = [2, 2], sizes = [14, 14], strides = [1, 1]} : vector<16x16xf32> to vector<14x14xf32>
    %c8_28 = arith.constant 8 : index
    %c1_29 = arith.constant 1 : index
    %93 = memref.load %arg3[%c8_28, %c1_29] : memref<9x4xf32, #tpu.memory_space<smem>>
    %94 = vector.broadcast %93 : f32 to vector<14x14xf32>
    %95 = arith.mulf %92, %94 : vector<14x14xf32>
    %96 = arith.addf %91, %95 : vector<14x14xf32>
    %97 = vector.extract_strided_slice %4 {offsets = [2, 0, 0], sizes = [1, 16, 16], strides = [1, 1, 1]} : vector<4x16x16xf32> to vector<1x16x16xf32>
    %98 = vector.shape_cast %97 : vector<1x16x16xf32> to vector<16x16xf32>
    %99 = vector.extract_strided_slice %98 {offsets = [0, 0], sizes = [14, 14], strides = [1, 1]} : vector<16x16xf32> to vector<14x14xf32>
    %c0_30 = arith.constant 0 : index
    %c2_31 = arith.constant 2 : index
    %100 = memref.load %arg3[%c0_30, %c2_31] : memref<9x4xf32, #tpu.memory_space<smem>>
    %101 = vector.broadcast %100 : f32 to vector<14x14xf32>
    %102 = arith.mulf %99, %101 : vector<14x14xf32>
    %103 = vector.extract_strided_slice %98 {offsets = [0, 1], sizes = [14, 14], strides = [1, 1]} : vector<16x16xf32> to vector<14x14xf32>
    %c1_32 = arith.constant 1 : index
    %c2_33 = arith.constant 2 : index
    %104 = memref.load %arg3[%c1_32, %c2_33] : memref<9x4xf32, #tpu.memory_space<smem>>
    %105 = vector.broadcast %104 : f32 to vector<14x14xf32>
    %106 = arith.mulf %103, %105 : vector<14x14xf32>
    %107 = arith.addf %102, %106 : vector<14x14xf32>
    %108 = vector.extract_strided_slice %98 {offsets = [0, 2], sizes = [14, 14], strides = [1, 1]} : vector<16x16xf32> to vector<14x14xf32>
    %c2_34 = arith.constant 2 : index
    %c2_35 = arith.constant 2 : index
    %109 = memref.load %arg3[%c2_34, %c2_35] : memref<9x4xf32, #tpu.memory_space<smem>>
    %110 = vector.broadcast %109 : f32 to vector<14x14xf32>
    %111 = arith.mulf %108, %110 : vector<14x14xf32>
    %112 = arith.addf %107, %111 : vector<14x14xf32>
    %113 = vector.extract_strided_slice %98 {offsets = [1, 0], sizes = [14, 14], strides = [1, 1]} : vector<16x16xf32> to vector<14x14xf32>
    %c3_36 = arith.constant 3 : index
    %c2_37 = arith.constant 2 : index
    %114 = memref.load %arg3[%c3_36, %c2_37] : memref<9x4xf32, #tpu.memory_space<smem>>
    %115 = vector.broadcast %114 : f32 to vector<14x14xf32>
    %116 = arith.mulf %113, %115 : vector<14x14xf32>
    %117 = arith.addf %112, %116 : vector<14x14xf32>
    %118 = vector.extract_strided_slice %98 {offsets = [1, 1], sizes = [14, 14], strides = [1, 1]} : vector<16x16xf32> to vector<14x14xf32>
    %c4_38 = arith.constant 4 : index
    %c2_39 = arith.constant 2 : index
    %119 = memref.load %arg3[%c4_38, %c2_39] : memref<9x4xf32, #tpu.memory_space<smem>>
    %120 = vector.broadcast %119 : f32 to vector<14x14xf32>
    %121 = arith.mulf %118, %120 : vector<14x14xf32>
    %122 = arith.addf %117, %121 : vector<14x14xf32>
    %123 = vector.extract_strided_slice %98 {offsets = [1, 2], sizes = [14, 14], strides = [1, 1]} : vector<16x16xf32> to vector<14x14xf32>
    %c5_40 = arith.constant 5 : index
    %c2_41 = arith.constant 2 : index
    %124 = memref.load %arg3[%c5_40, %c2_41] : memref<9x4xf32, #tpu.memory_space<smem>>
    %125 = vector.broadcast %124 : f32 to vector<14x14xf32>
    %126 = arith.mulf %123, %125 : vector<14x14xf32>
    %127 = arith.addf %122, %126 : vector<14x14xf32>
    %128 = vector.extract_strided_slice %98 {offsets = [2, 0], sizes = [14, 14], strides = [1, 1]} : vector<16x16xf32> to vector<14x14xf32>
    %c6_42 = arith.constant 6 : index
    %c2_43 = arith.constant 2 : index
    %129 = memref.load %arg3[%c6_42, %c2_43] : memref<9x4xf32, #tpu.memory_space<smem>>
    %130 = vector.broadcast %129 : f32 to vector<14x14xf32>
    %131 = arith.mulf %128, %130 : vector<14x14xf32>
    %132 = arith.addf %127, %131 : vector<14x14xf32>
    %133 = vector.extract_strided_slice %98 {offsets = [2, 1], sizes = [14, 14], strides = [1, 1]} : vector<16x16xf32> to vector<14x14xf32>
    %c7_44 = arith.constant 7 : index
    %c2_45 = arith.constant 2 : index
    %134 = memref.load %arg3[%c7_44, %c2_45] : memref<9x4xf32, #tpu.memory_space<smem>>
    %135 = vector.broadcast %134 : f32 to vector<14x14xf32>
    %136 = arith.mulf %133, %135 : vector<14x14xf32>
    %137 = arith.addf %132, %136 : vector<14x14xf32>
    %138 = vector.extract_strided_slice %98 {offsets = [2, 2], sizes = [14, 14], strides = [1, 1]} : vector<16x16xf32> to vector<14x14xf32>
    %c8_46 = arith.constant 8 : index
    %c2_47 = arith.constant 2 : index
    %139 = memref.load %arg3[%c8_46, %c2_47] : memref<9x4xf32, #tpu.memory_space<smem>>
    %140 = vector.broadcast %139 : f32 to vector<14x14xf32>
    %141 = arith.mulf %138, %140 : vector<14x14xf32>
    %142 = arith.addf %137, %141 : vector<14x14xf32>
    %143 = vector.extract_strided_slice %4 {offsets = [3, 0, 0], sizes = [1, 16, 16], strides = [1, 1, 1]} : vector<4x16x16xf32> to vector<1x16x16xf32>
    %144 = vector.shape_cast %143 : vector<1x16x16xf32> to vector<16x16xf32>
    %145 = vector.extract_strided_slice %144 {offsets = [0, 0], sizes = [14, 14], strides = [1, 1]} : vector<16x16xf32> to vector<14x14xf32>
    %c0_48 = arith.constant 0 : index
    %c3_49 = arith.constant 3 : index
    %146 = memref.load %arg3[%c0_48, %c3_49] : memref<9x4xf32, #tpu.memory_space<smem>>
    %147 = vector.broadcast %146 : f32 to vector<14x14xf32>
    %148 = arith.mulf %145, %147 : vector<14x14xf32>
    %149 = vector.extract_strided_slice %144 {offsets = [0, 1], sizes = [14, 14], strides = [1, 1]} : vector<16x16xf32> to vector<14x14xf32>
    %c1_50 = arith.constant 1 : index
    %c3_51 = arith.constant 3 : index
    %150 = memref.load %arg3[%c1_50, %c3_51] : memref<9x4xf32, #tpu.memory_space<smem>>
    %151 = vector.broadcast %150 : f32 to vector<14x14xf32>
    %152 = arith.mulf %149, %151 : vector<14x14xf32>
    %153 = arith.addf %148, %152 : vector<14x14xf32>
    %154 = vector.extract_strided_slice %144 {offsets = [0, 2], sizes = [14, 14], strides = [1, 1]} : vector<16x16xf32> to vector<14x14xf32>
    %c2_52 = arith.constant 2 : index
    %c3_53 = arith.constant 3 : index
    %155 = memref.load %arg3[%c2_52, %c3_53] : memref<9x4xf32, #tpu.memory_space<smem>>
    %156 = vector.broadcast %155 : f32 to vector<14x14xf32>
    %157 = arith.mulf %154, %156 : vector<14x14xf32>
    %158 = arith.addf %153, %157 : vector<14x14xf32>
    %159 = vector.extract_strided_slice %144 {offsets = [1, 0], sizes = [14, 14], strides = [1, 1]} : vector<16x16xf32> to vector<14x14xf32>
    %c3_54 = arith.constant 3 : index
    %c3_55 = arith.constant 3 : index
    %160 = memref.load %arg3[%c3_54, %c3_55] : memref<9x4xf32, #tpu.memory_space<smem>>
    %161 = vector.broadcast %160 : f32 to vector<14x14xf32>
    %162 = arith.mulf %159, %161 : vector<14x14xf32>
    %163 = arith.addf %158, %162 : vector<14x14xf32>
    %164 = vector.extract_strided_slice %144 {offsets = [1, 1], sizes = [14, 14], strides = [1, 1]} : vector<16x16xf32> to vector<14x14xf32>
    %c4_56 = arith.constant 4 : index
    %c3_57 = arith.constant 3 : index
    %165 = memref.load %arg3[%c4_56, %c3_57] : memref<9x4xf32, #tpu.memory_space<smem>>
    %166 = vector.broadcast %165 : f32 to vector<14x14xf32>
    %167 = arith.mulf %164, %166 : vector<14x14xf32>
    %168 = arith.addf %163, %167 : vector<14x14xf32>
    %169 = vector.extract_strided_slice %144 {offsets = [1, 2], sizes = [14, 14], strides = [1, 1]} : vector<16x16xf32> to vector<14x14xf32>
    %c5_58 = arith.constant 5 : index
    %c3_59 = arith.constant 3 : index
    %170 = memref.load %arg3[%c5_58, %c3_59] : memref<9x4xf32, #tpu.memory_space<smem>>
    %171 = vector.broadcast %170 : f32 to vector<14x14xf32>
    %172 = arith.mulf %169, %171 : vector<14x14xf32>
    %173 = arith.addf %168, %172 : vector<14x14xf32>
    %174 = vector.extract_strided_slice %144 {offsets = [2, 0], sizes = [14, 14], strides = [1, 1]} : vector<16x16xf32> to vector<14x14xf32>
    %c6_60 = arith.constant 6 : index
    %c3_61 = arith.constant 3 : index
    %175 = memref.load %arg3[%c6_60, %c3_61] : memref<9x4xf32, #tpu.memory_space<smem>>
    %176 = vector.broadcast %175 : f32 to vector<14x14xf32>
    %177 = arith.mulf %174, %176 : vector<14x14xf32>
    %178 = arith.addf %173, %177 : vector<14x14xf32>
    %179 = vector.extract_strided_slice %144 {offsets = [2, 1], sizes = [14, 14], strides = [1, 1]} : vector<16x16xf32> to vector<14x14xf32>
    %c7_62 = arith.constant 7 : index
    %c3_63 = arith.constant 3 : index
    %180 = memref.load %arg3[%c7_62, %c3_63] : memref<9x4xf32, #tpu.memory_space<smem>>
    %181 = vector.broadcast %180 : f32 to vector<14x14xf32>
    %182 = arith.mulf %179, %181 : vector<14x14xf32>
    %183 = arith.addf %178, %182 : vector<14x14xf32>
    %184 = vector.extract_strided_slice %144 {offsets = [2, 2], sizes = [14, 14], strides = [1, 1]} : vector<16x16xf32> to vector<14x14xf32>
    %c8_64 = arith.constant 8 : index
    %c3_65 = arith.constant 3 : index
    %185 = memref.load %arg3[%c8_64, %c3_65] : memref<9x4xf32, #tpu.memory_space<smem>>
    %186 = vector.broadcast %185 : f32 to vector<14x14xf32>
    %187 = arith.mulf %184, %186 : vector<14x14xf32>
    %188 = arith.addf %183, %187 : vector<14x14xf32>
    %c0_66 = arith.constant 0 : index
    %c0_67 = arith.constant 0 : index
    %189 = memref.load %arg4[%c0_66, %c0_67] : memref<4x8xf32, #tpu.memory_space<smem>>
    %190 = vector.broadcast %189 : f32 to vector<14x14xf32>
    %191 = arith.mulf %50, %190 : vector<14x14xf32>
    %c1_68 = arith.constant 1 : index
    %c0_69 = arith.constant 0 : index
    %192 = memref.load %arg4[%c1_68, %c0_69] : memref<4x8xf32, #tpu.memory_space<smem>>
    %193 = vector.broadcast %192 : f32 to vector<14x14xf32>
    %194 = arith.mulf %96, %193 : vector<14x14xf32>
    %195 = arith.addf %191, %194 : vector<14x14xf32>
    %c2_70 = arith.constant 2 : index
    %c0_71 = arith.constant 0 : index
    %196 = memref.load %arg4[%c2_70, %c0_71] : memref<4x8xf32, #tpu.memory_space<smem>>
    %197 = vector.broadcast %196 : f32 to vector<14x14xf32>
    %198 = arith.mulf %142, %197 : vector<14x14xf32>
    %199 = arith.addf %195, %198 : vector<14x14xf32>
    %c3_72 = arith.constant 3 : index
    %c0_73 = arith.constant 0 : index
    %200 = memref.load %arg4[%c3_72, %c0_73] : memref<4x8xf32, #tpu.memory_space<smem>>
    %201 = vector.broadcast %200 : f32 to vector<14x14xf32>
    %202 = arith.mulf %188, %201 : vector<14x14xf32>
    %203 = arith.addf %199, %202 : vector<14x14xf32>
    %c0_74 = arith.constant 0 : index
    %c0_75 = arith.constant 0 : index
    %204 = memref.load %arg5[%c0_74, %c0_75] : memref<1x8xf32, #tpu.memory_space<smem>>
    %205 = vector.broadcast %204 : f32 to vector<14x14xf32>
    %206 = arith.addf %203, %205 : vector<14x14xf32>
    %c0_76 = arith.constant 0 : index
    %c0_77 = arith.constant 0 : index
    %c0_78 = arith.constant 0 : index
    %c0_79 = arith.constant 0 : index
    %207 = vector.load %arg6[%c0_76, %c0_77, %c0_78, %c0_79] : memref<1x8x14x14xf32, #tpu.memory_space<vmem>>, vector<1x1x14x14xf32>
    %208 = vector.shape_cast %207 : vector<1x1x14x14xf32> to vector<14x14xf32>
    %209 = vector.shape_cast %206 : vector<14x14xf32> to vector<1x1x14x14xf32>
    tpu.vector_store %arg6[%c0_76, %c0_77, %c0_78, %c0_79], %209 {strides = array<i32>} : memref<1x8x14x14xf32, #tpu.memory_space<vmem>>, vector<1x1x14x14xf32>,
    %c0_80 = arith.constant 0 : index
    %c1_81 = arith.constant 1 : index
    %210 = memref.load %arg4[%c0_80, %c1_81] : memref<4x8xf32, #tpu.memory_space<smem>>
    %211 = vector.broadcast %210 : f32 to vector<14x14xf32>
    %212 = arith.mulf %50, %211 : vector<14x14xf32>
    %c1_82 = arith.constant 1 : index
    %c1_83 = arith.constant 1 : index
    %213 = memref.load %arg4[%c1_82, %c1_83] : memref<4x8xf32, #tpu.memory_space<smem>>
    %214 = vector.broadcast %213 : f32 to vector<14x14xf32>
    %215 = arith.mulf %96, %214 : vector<14x14xf32>
    %216 = arith.addf %212, %215 : vector<14x14xf32>
    %c2_84 = arith.constant 2 : index
    %c1_85 = arith.constant 1 : index
    %217 = memref.load %arg4[%c2_84, %c1_85] : memref<4x8xf32, #tpu.memory_space<smem>>
    %218 = vector.broadcast %217 : f32 to vector<14x14xf32>
    %219 = arith.mulf %142, %218 : vector<14x14xf32>
    %220 = arith.addf %216, %219 : vector<14x14xf32>
    %c3_86 = arith.constant 3 : index
    %c1_87 = arith.constant 1 : index
    %221 = memref.load %arg4[%c3_86, %c1_87] : memref<4x8xf32, #tpu.memory_space<smem>>
    %222 = vector.broadcast %221 : f32 to vector<14x14xf32>
    %223 = arith.mulf %188, %222 : vector<14x14xf32>
    %224 = arith.addf %220, %223 : vector<14x14xf32>
    %c0_88 = arith.constant 0 : index
    %c1_89 = arith.constant 1 : index
    %225 = memref.load %arg5[%c0_88, %c1_89] : memref<1x8xf32, #tpu.memory_space<smem>>
    %226 = vector.broadcast %225 : f32 to vector<14x14xf32>
    %227 = arith.addf %224, %226 : vector<14x14xf32>
    %c0_90 = arith.constant 0 : index
    %c1_91 = arith.constant 1 : index
    %c0_92 = arith.constant 0 : index
    %c0_93 = arith.constant 0 : index
    %228 = vector.load %arg6[%c0_90, %c1_91, %c0_92, %c0_93] : memref<1x8x14x14xf32, #tpu.memory_space<vmem>>, vector<1x1x14x14xf32>
    %229 = vector.shape_cast %228 : vector<1x1x14x14xf32> to vector<14x14xf32>
    %230 = vector.shape_cast %227 : vector<14x14xf32> to vector<1x1x14x14xf32>
    tpu.vector_store %arg6[%c0_90, %c1_91, %c0_92, %c0_93], %230 {strides = array<i32>} : memref<1x8x14x14xf32, #tpu.memory_space<vmem>>, vector<1x1x14x14xf32>,
    %c0_94 = arith.constant 0 : index
    %c2_95 = arith.constant 2 : index
    %231 = memref.load %arg4[%c0_94, %c2_95] : memref<4x8xf32, #tpu.memory_space<smem>>
    %232 = vector.broadcast %231 : f32 to vector<14x14xf32>
    %233 = arith.mulf %50, %232 : vector<14x14xf32>
    %c1_96 = arith.constant 1 : index
    %c2_97 = arith.constant 2 : index
    %234 = memref.load %arg4[%c1_96, %c2_97] : memref<4x8xf32, #tpu.memory_space<smem>>
    %235 = vector.broadcast %234 : f32 to vector<14x14xf32>
    %236 = arith.mulf %96, %235 : vector<14x14xf32>
    %237 = arith.addf %233, %236 : vector<14x14xf32>
    %c2_98 = arith.constant 2 : index
    %c2_99 = arith.constant 2 : index
    %238 = memref.load %arg4[%c2_98, %c2_99] : memref<4x8xf32, #tpu.memory_space<smem>>
    %239 = vector.broadcast %238 : f32 to vector<14x14xf32>
    %240 = arith.mulf %142, %239 : vector<14x14xf32>
    %241 = arith.addf %237, %240 : vector<14x14xf32>
    %c3_100 = arith.constant 3 : index
    %c2_101 = arith.constant 2 : index
    %242 = memref.load %arg4[%c3_100, %c2_101] : memref<4x8xf32, #tpu.memory_space<smem>>
    %243 = vector.broadcast %242 : f32 to vector<14x14xf32>
    %244 = arith.mulf %188, %243 : vector<14x14xf32>
    %245 = arith.addf %241, %244 : vector<14x14xf32>
    %c0_102 = arith.constant 0 : index
    %c2_103 = arith.constant 2 : index
    %246 = memref.load %arg5[%c0_102, %c2_103] : memref<1x8xf32, #tpu.memory_space<smem>>
    %247 = vector.broadcast %246 : f32 to vector<14x14xf32>
    %248 = arith.addf %245, %247 : vector<14x14xf32>
    %c0_104 = arith.constant 0 : index
    %c2_105 = arith.constant 2 : index
    %c0_106 = arith.constant 0 : index
    %c0_107 = arith.constant 0 : index
    %249 = vector.load %arg6[%c0_104, %c2_105, %c0_106, %c0_107] : memref<1x8x14x14xf32, #tpu.memory_space<vmem>>, vector<1x1x14x14xf32>
    %250 = vector.shape_cast %249 : vector<1x1x14x14xf32> to vector<14x14xf32>
    %251 = vector.shape_cast %248 : vector<14x14xf32> to vector<1x1x14x14xf32>
    tpu.vector_store %arg6[%c0_104, %c2_105, %c0_106, %c0_107], %251 {strides = array<i32>} : memref<1x8x14x14xf32, #tpu.memory_space<vmem>>, vector<1x1x14x14xf32>,
    %c0_108 = arith.constant 0 : index
    %c3_109 = arith.constant 3 : index
    %252 = memref.load %arg4[%c0_108, %c3_109] : memref<4x8xf32, #tpu.memory_space<smem>>
    %253 = vector.broadcast %252 : f32 to vector<14x14xf32>
    %254 = arith.mulf %50, %253 : vector<14x14xf32>
    %c1_110 = arith.constant 1 : index
    %c3_111 = arith.constant 3 : index
    %255 = memref.load %arg4[%c1_110, %c3_111] : memref<4x8xf32, #tpu.memory_space<smem>>
    %256 = vector.broadcast %255 : f32 to vector<14x14xf32>
    %257 = arith.mulf %96, %256 : vector<14x14xf32>
    %258 = arith.addf %254, %257 : vector<14x14xf32>
    %c2_112 = arith.constant 2 : index
    %c3_113 = arith.constant 3 : index
    %259 = memref.load %arg4[%c2_112, %c3_113] : memref<4x8xf32, #tpu.memory_space<smem>>
    %260 = vector.broadcast %259 : f32 to vector<14x14xf32>
    %261 = arith.mulf %142, %260 : vector<14x14xf32>
    %262 = arith.addf %258, %261 : vector<14x14xf32>
    %c3_114 = arith.constant 3 : index
    %c3_115 = arith.constant 3 : index
    %263 = memref.load %arg4[%c3_114, %c3_115] : memref<4x8xf32, #tpu.memory_space<smem>>
    %264 = vector.broadcast %263 : f32 to vector<14x14xf32>
    %265 = arith.mulf %188, %264 : vector<14x14xf32>
    %266 = arith.addf %262, %265 : vector<14x14xf32>
    %c0_116 = arith.constant 0 : index
    %c3_117 = arith.constant 3 : index
    %267 = memref.load %arg5[%c0_116, %c3_117] : memref<1x8xf32, #tpu.memory_space<smem>>
    %268 = vector.broadcast %267 : f32 to vector<14x14xf32>
    %269 = arith.addf %266, %268 : vector<14x14xf32>
    %c0_118 = arith.constant 0 : index
    %c3_119 = arith.constant 3 : index
    %c0_120 = arith.constant 0 : index
    %c0_121 = arith.constant 0 : index
    %270 = vector.load %arg6[%c0_118, %c3_119, %c0_120, %c0_121] : memref<1x8x14x14xf32, #tpu.memory_space<vmem>>, vector<1x1x14x14xf32>
    %271 = vector.shape_cast %270 : vector<1x1x14x14xf32> to vector<14x14xf32>
    %272 = vector.shape_cast %269 : vector<14x14xf32> to vector<1x1x14x14xf32>
    tpu.vector_store %arg6[%c0_118, %c3_119, %c0_120, %c0_121], %272 {strides = array<i32>} : memref<1x8x14x14xf32, #tpu.memory_space<vmem>>, vector<1x1x14x14xf32>,
    %c0_122 = arith.constant 0 : index
    %c4_123 = arith.constant 4 : index
    %273 = memref.load %arg4[%c0_122, %c4_123] : memref<4x8xf32, #tpu.memory_space<smem>>
    %274 = vector.broadcast %273 : f32 to vector<14x14xf32>
    %275 = arith.mulf %50, %274 : vector<14x14xf32>
    %c1_124 = arith.constant 1 : index
    %c4_125 = arith.constant 4 : index
    %276 = memref.load %arg4[%c1_124, %c4_125] : memref<4x8xf32, #tpu.memory_space<smem>>
    %277 = vector.broadcast %276 : f32 to vector<14x14xf32>
    %278 = arith.mulf %96, %277 : vector<14x14xf32>
    %279 = arith.addf %275, %278 : vector<14x14xf32>
    %c2_126 = arith.constant 2 : index
    %c4_127 = arith.constant 4 : index
    %280 = memref.load %arg4[%c2_126, %c4_127] : memref<4x8xf32, #tpu.memory_space<smem>>
    %281 = vector.broadcast %280 : f32 to vector<14x14xf32>
    %282 = arith.mulf %142, %281 : vector<14x14xf32>
    %283 = arith.addf %279, %282 : vector<14x14xf32>
    %c3_128 = arith.constant 3 : index
    %c4_129 = arith.constant 4 : index
    %284 = memref.load %arg4[%c3_128, %c4_129] : memref<4x8xf32, #tpu.memory_space<smem>>
    %285 = vector.broadcast %284 : f32 to vector<14x14xf32>
    %286 = arith.mulf %188, %285 : vector<14x14xf32>
    %287 = arith.addf %283, %286 : vector<14x14xf32>
    %c0_130 = arith.constant 0 : index
    %c4_131 = arith.constant 4 : index
    %288 = memref.load %arg5[%c0_130, %c4_131] : memref<1x8xf32, #tpu.memory_space<smem>>
    %289 = vector.broadcast %288 : f32 to vector<14x14xf32>
    %290 = arith.addf %287, %289 : vector<14x14xf32>
    %c0_132 = arith.constant 0 : index
    %c4_133 = arith.constant 4 : index
    %c0_134 = arith.constant 0 : index
    %c0_135 = arith.constant 0 : index
    %291 = vector.load %arg6[%c0_132, %c4_133, %c0_134, %c0_135] : memref<1x8x14x14xf32, #tpu.memory_space<vmem>>, vector<1x1x14x14xf32>
    %292 = vector.shape_cast %291 : vector<1x1x14x14xf32> to vector<14x14xf32>
    %293 = vector.shape_cast %290 : vector<14x14xf32> to vector<1x1x14x14xf32>
    tpu.vector_store %arg6[%c0_132, %c4_133, %c0_134, %c0_135], %293 {strides = array<i32>} : memref<1x8x14x14xf32, #tpu.memory_space<vmem>>, vector<1x1x14x14xf32>,
    %c0_136 = arith.constant 0 : index
    %c5_137 = arith.constant 5 : index
    %294 = memref.load %arg4[%c0_136, %c5_137] : memref<4x8xf32, #tpu.memory_space<smem>>
    %295 = vector.broadcast %294 : f32 to vector<14x14xf32>
    %296 = arith.mulf %50, %295 : vector<14x14xf32>
    %c1_138 = arith.constant 1 : index
    %c5_139 = arith.constant 5 : index
    %297 = memref.load %arg4[%c1_138, %c5_139] : memref<4x8xf32, #tpu.memory_space<smem>>
    %298 = vector.broadcast %297 : f32 to vector<14x14xf32>
    %299 = arith.mulf %96, %298 : vector<14x14xf32>
    %300 = arith.addf %296, %299 : vector<14x14xf32>
    %c2_140 = arith.constant 2 : index
    %c5_141 = arith.constant 5 : index
    %301 = memref.load %arg4[%c2_140, %c5_141] : memref<4x8xf32, #tpu.memory_space<smem>>
    %302 = vector.broadcast %301 : f32 to vector<14x14xf32>
    %303 = arith.mulf %142, %302 : vector<14x14xf32>
    %304 = arith.addf %300, %303 : vector<14x14xf32>
    %c3_142 = arith.constant 3 : index
    %c5_143 = arith.constant 5 : index
    %305 = memref.load %arg4[%c3_142, %c5_143] : memref<4x8xf32, #tpu.memory_space<smem>>
    %306 = vector.broadcast %305 : f32 to vector<14x14xf32>
    %307 = arith.mulf %188, %306 : vector<14x14xf32>
    %308 = arith.addf %304, %307 : vector<14x14xf32>
    %c0_144 = arith.constant 0 : index
    %c5_145 = arith.constant 5 : index
    %309 = memref.load %arg5[%c0_144, %c5_145] : memref<1x8xf32, #tpu.memory_space<smem>>
    %310 = vector.broadcast %309 : f32 to vector<14x14xf32>
    %311 = arith.addf %308, %310 : vector<14x14xf32>
    %c0_146 = arith.constant 0 : index
    %c5_147 = arith.constant 5 : index
    %c0_148 = arith.constant 0 : index
    %c0_149 = arith.constant 0 : index
    %312 = vector.load %arg6[%c0_146, %c5_147, %c0_148, %c0_149] : memref<1x8x14x14xf32, #tpu.memory_space<vmem>>, vector<1x1x14x14xf32>
    %313 = vector.shape_cast %312 : vector<1x1x14x14xf32> to vector<14x14xf32>
    %314 = vector.shape_cast %311 : vector<14x14xf32> to vector<1x1x14x14xf32>
    tpu.vector_store %arg6[%c0_146, %c5_147, %c0_148, %c0_149], %314 {strides = array<i32>} : memref<1x8x14x14xf32, #tpu.memory_space<vmem>>, vector<1x1x14x14xf32>,
    %c0_150 = arith.constant 0 : index
    %c6_151 = arith.constant 6 : index
    %315 = memref.load %arg4[%c0_150, %c6_151] : memref<4x8xf32, #tpu.memory_space<smem>>
    %316 = vector.broadcast %315 : f32 to vector<14x14xf32>
    %317 = arith.mulf %50, %316 : vector<14x14xf32>
    %c1_152 = arith.constant 1 : index
    %c6_153 = arith.constant 6 : index
    %318 = memref.load %arg4[%c1_152, %c6_153] : memref<4x8xf32, #tpu.memory_space<smem>>
    %319 = vector.broadcast %318 : f32 to vector<14x14xf32>
    %320 = arith.mulf %96, %319 : vector<14x14xf32>
    %321 = arith.addf %317, %320 : vector<14x14xf32>
    %c2_154 = arith.constant 2 : index
    %c6_155 = arith.constant 6 : index
    %322 = memref.load %arg4[%c2_154, %c6_155] : memref<4x8xf32, #tpu.memory_space<smem>>
    %323 = vector.broadcast %322 : f32 to vector<14x14xf32>
    %324 = arith.mulf %142, %323 : vector<14x14xf32>
    %325 = arith.addf %321, %324 : vector<14x14xf32>
    %c3_156 = arith.constant 3 : index
    %c6_157 = arith.constant 6 : index
    %326 = memref.load %arg4[%c3_156, %c6_157] : memref<4x8xf32, #tpu.memory_space<smem>>
    %327 = vector.broadcast %326 : f32 to vector<14x14xf32>
    %328 = arith.mulf %188, %327 : vector<14x14xf32>
    %329 = arith.addf %325, %328 : vector<14x14xf32>
    %c0_158 = arith.constant 0 : index
    %c6_159 = arith.constant 6 : index
    %330 = memref.load %arg5[%c0_158, %c6_159] : memref<1x8xf32, #tpu.memory_space<smem>>
    %331 = vector.broadcast %330 : f32 to vector<14x14xf32>
    %332 = arith.addf %329, %331 : vector<14x14xf32>
    %c0_160 = arith.constant 0 : index
    %c6_161 = arith.constant 6 : index
    %c0_162 = arith.constant 0 : index
    %c0_163 = arith.constant 0 : index
    %333 = vector.load %arg6[%c0_160, %c6_161, %c0_162, %c0_163] : memref<1x8x14x14xf32, #tpu.memory_space<vmem>>, vector<1x1x14x14xf32>
    %334 = vector.shape_cast %333 : vector<1x1x14x14xf32> to vector<14x14xf32>
    %335 = vector.shape_cast %332 : vector<14x14xf32> to vector<1x1x14x14xf32>
    tpu.vector_store %arg6[%c0_160, %c6_161, %c0_162, %c0_163], %335 {strides = array<i32>} : memref<1x8x14x14xf32, #tpu.memory_space<vmem>>, vector<1x1x14x14xf32>,
    %c0_164 = arith.constant 0 : index
    %c7_165 = arith.constant 7 : index
    %336 = memref.load %arg4[%c0_164, %c7_165] : memref<4x8xf32, #tpu.memory_space<smem>>
    %337 = vector.broadcast %336 : f32 to vector<14x14xf32>
    %338 = arith.mulf %50, %337 : vector<14x14xf32>
    %c1_166 = arith.constant 1 : index
    %c7_167 = arith.constant 7 : index
    %339 = memref.load %arg4[%c1_166, %c7_167] : memref<4x8xf32, #tpu.memory_space<smem>>
    %340 = vector.broadcast %339 : f32 to vector<14x14xf32>
    %341 = arith.mulf %96, %340 : vector<14x14xf32>
    %342 = arith.addf %338, %341 : vector<14x14xf32>
    %c2_168 = arith.constant 2 : index
    %c7_169 = arith.constant 7 : index
    %343 = memref.load %arg4[%c2_168, %c7_169] : memref<4x8xf32, #tpu.memory_space<smem>>
    %344 = vector.broadcast %343 : f32 to vector<14x14xf32>
    %345 = arith.mulf %142, %344 : vector<14x14xf32>
    %346 = arith.addf %342, %345 : vector<14x14xf32>
    %c3_170 = arith.constant 3 : index
    %c7_171 = arith.constant 7 : index
    %347 = memref.load %arg4[%c3_170, %c7_171] : memref<4x8xf32, #tpu.memory_space<smem>>
    %348 = vector.broadcast %347 : f32 to vector<14x14xf32>
    %349 = arith.mulf %188, %348 : vector<14x14xf32>
    %350 = arith.addf %346, %349 : vector<14x14xf32>
    %c0_172 = arith.constant 0 : index
    %c7_173 = arith.constant 7 : index
    %351 = memref.load %arg5[%c0_172, %c7_173] : memref<1x8xf32, #tpu.memory_space<smem>>
    %352 = vector.broadcast %351 : f32 to vector<14x14xf32>
    %353 = arith.addf %350, %352 : vector<14x14xf32>
    %c0_174 = arith.constant 0 : index
    %c7_175 = arith.constant 7 : index
    %c0_176 = arith.constant 0 : index
    %c0_177 = arith.constant 0 : index
    %354 = vector.load %arg6[%c0_174, %c7_175, %c0_176, %c0_177] : memref<1x8x14x14xf32, #tpu.memory_space<vmem>>, vector<1x1x14x14xf32>
    %355 = vector.shape_cast %354 : vector<1x1x14x14xf32> to vector<14x14xf32>
    %356 = vector.shape_cast %353 : vector<14x14xf32> to vector<1x1x14x14xf32>
    tpu.vector_store %arg6[%c0_174, %c7_175, %c0_176, %c0_177], %356 {strides = array<i32>} : memref<1x8x14x14xf32, #tpu.memory_space<vmem>>, vector<1x1x14x14xf32>,
    return
  }
  func.func @transform_0(%arg0: i32, %arg1: i32) -> (i32, i32, i32, i32) {
    %c0_i32 = arith.constant 0 : i32
    %c0_i32_0 = arith.constant 0 : i32
    %c0_i32_1 = arith.constant 0 : i32
    %c0_i32_2 = arith.constant 0 : i32
    return %arg0, %c0_i32, %c0_i32_0, %c0_i32_1 : i32, i32, i32, i32
  }
  func.func @transform_1(%arg0: i32, %arg1: i32) -> (i32, i32) {
    %c0_i32 = arith.constant 0 : i32
    %c0_i32_0 = arith.constant 0 : i32
    %c0_i32_1 = arith.constant 0 : i32
    return %c0_i32, %c0_i32_0 : i32, i32
  }
  func.func @transform_2(%arg0: i32, %arg1: i32) -> (i32, i32) {
    %c0_i32 = arith.constant 0 : i32
    %c0_i32_0 = arith.constant 0 : i32
    %c0_i32_1 = arith.constant 0 : i32
    return %c0_i32, %c0_i32_0 : i32, i32
  }
  func.func @transform_3(%arg0: i32, %arg1: i32) -> (i32, i32) {
    %c0_i32 = arith.constant 0 : i32
    %c0_i32_0 = arith.constant 0 : i32
    %c0_i32_1 = arith.constant 0 : i32
    return %c0_i32, %c0_i32_0 : i32, i32
  }
  func.func @transform_4(%arg0: i32, %arg1: i32) -> (i32, i32, i32, i32) {
    %c0_i32 = arith.constant 0 : i32
    %c0_i32_0 = arith.constant 0 : i32
    %c0_i32_1 = arith.constant 0 : i32
    return %arg0, %c0_i32, %arg1, %c0_i32_0 : i32, i32, i32, i32
  }
}

</mosaic_0001>

<bundles_post_ra>
// kernel: tpu_custom_call.1
= control target key start
LH: loop header
LB: loop body
LE: loop exit
PB: predicated region body
PF: predicated region fallthrough
CT: control target
= control target key end

     0   :  { %s2365_s0 = inlined_call_operand.hbm [shape: f32[2,4,16,16], index: 0, kind: input, shape index: {}]   ;;  %s2366_s1 = inlined_call_operand.vmem [shape: f32[9,4], index: 1, kind: input, shape index: {}]   ;;  %s2367_s2 = inlined_call_operand.vmem [shape: f32[4,8], index: 2, kind: input, shape index: {}]   ;;  %s2368_s3 = inlined_call_operand.vmem [shape: f32[1,8], index: 3, kind: input, shape index: {}]   ;;  %s2369_s4 = inlined_call_operand.vmem [shape: f32[2,8,14,14], index: 4, kind: output, shape index: {}]  }
   0x1   :  { %2376 = sst [smem:[#allocation15_spill]] %s2365_s0 }
   0x2   :  { %2377 = sst [smem:[#allocation16_spill]] %s2366_s1 }
   0x3   :  { %2378 = sst [smem:[#allocation17_spill]] %s2367_s2 }
   0x4   :  { %2379 = sst [smem:[#allocation18_spill]] %s2368_s3 }
   0x5   :  { %9 = vsyncpa [#allocation3], 0 }
   0x6   :  { %11 = vsyncpa [#allocation3 + $0x1], 0 }
   0x7   :  { %12 = vsyncpa [#allocation4], 0 }
   0x8   :  { %13 = vsyncpa [#allocation7], 0  ;;  %s1522_s15 = smov 0   ;;  %s1524_s16 = smov 0  }
   0x9   :  { %s1526_s17 = smov 0   ;;  %s1528_s18 = smov 0  }
   0xa   :  { %s1530_s19 = smov 0   ;;  %s1532_s20 = smov 0  }
   0xb LB: > { %2380 = sst [smem:[#allocation12_spill]] %s1483_s19  ;;  %s1156_s21 = sadd.s32 4294967295, %s1487_s20   ;;  %s1487_s20 = sphi %s1532_s20, %s19_s20   ;;  %s1483_s19 = sphi %s1530_s19, %s2402_s19   ;;  %s1479_s18 = sphi %s1528_s18, %s2401_s18   ;;  %s1475_s17 = sphi %s1526_s17, %s2400_s17   ;;  %s1471_s16 = sphi %s1524_s16, %s2399_s16   ;;  %s1467_s15 = sphi %s1522_s15, %s2398_s15  }
   0xc   : > { %p51_p0 = scmp.ne.s32.totalorder %s1471_s16, %s1467_s15  ;;  %p1552_p1 = scmp.eq.s32.totalorder %s1156_s21, 0 }
   0xd   : > { %p1158_p2 = scmp.ge.s32.totalorder %s1487_s20, 1  ;;  %p153_p3 = scmp.lt.s32.totalorder %s1487_s20, 3 }
   0xe   : > { %s2381_s22 = scalar_select %p1552_p1, 1, 0 }
   0xf   : > { %p1560_p4 = por %p1552_p1, %p51_p0  ;;  %s2383_s2 = sld [smem:[#allocation17_spill]] }
  0x10   : > { %p1567_p5 = pnand %p1158_p2, %p153_p3  ;;  %s2385_s1 = sld [smem:[#allocation16_spill]] }
  0x11   : > { %s2382_s23 = scalar_select %p1560_p4, 1, 0 }
  0x12   : > { %s2384_s27 = scalar_select %p1567_p5, 1, 0 }
  0x13   : > { %p1278_p6 = pneg %p1567_p5 }
  0x15   : > { %s179_s26 = sshll.u32 %s2383_s2, 4  ;;  %p1578_p7 = pnand %p1278_p6, %p1552_p1  ;;  %s180_s26 = int_to_ptr.vmem [resolvable:$true] %s179_s26 }
  0x16   : > { %s165_s30 = sshll.u32 %s2385_s1, 4  ;;  %s1354_s6 = scalar_lea.vmem %s180_s26, 64  ;;  %s166_s30 = int_to_ptr.vmem [resolvable:$true] %s165_s30 }
  0x17   : > { %p1355_p8 = scmp.ne.s32.totalorder %s180_s26, %s1354_s6  ;;  %p1356_p9 = pneg %p1578_p7 }
  0x18   : > { %p1362_p12 = scmp.lt.s32.totalorder %s180_s26, %s180_s26  ;;  %p1363_p13 = scmp.lt.s32.totalorder %s1354_s6, %s1354_s6 }
  0x19   : > { %p1357_p10 = pnand %p1356_p9, %p1355_p8 }
  0x1a   : > { %p1364_p0 = por %p1363_p13, %p1362_p12 }
  0x1b   : > { %p1358_p11 = pneg %p1357_p10 }
  0x1d   : > { %p1365_p2 = pnand %p1364_p0, %p1358_p11 }
  0x1f   : > { %1368 = shalt.err (!%p1365_p2)
}
  0x20   : > { %s1489_s7 = smov [#allocation6]   ;;  %s1369_s8 = scalar_lea.vmem %s166_s30, 256 }
  0x21   : > { %1284 = dma.vmem_to_smem (!%p1578_p7), %s180_s26, 64, %s1489_s7, [#allocation7]  }
  0x22   : > { %p1370_p3 = scmp.ne.s32.totalorder %s166_s30, %s1369_s8  ;;  %p1377_p4 = scmp.lt.s32.totalorder %s166_s30, %s166_s30 }
  0x23   : > { %p1378_p5 = scmp.lt.s32.totalorder %s1369_s8, %s1369_s8 }
  0x24   : > { %p1372_p6 = pnand %p1370_p3, %p1356_p9 }
  0x25   : > { %p1379_p8 = por %p1378_p5, %p1377_p4 }
  0x26   : > { %p1373_p1 = pneg %p1372_p6 }
  0x28   : > { %p1380_p10 = pnand %p1379_p8, %p1373_p1 }
  0x2a   : > { %1383 = shalt.err (!%p1380_p10)
}
  0x2b   : > { %s1490_s9 = smov [#allocation5]   ;;  %s1491_s10 = smov 128  }
  0x2c   : > { %s1492_s11 = smov 8   ;;  %s2387_s3 = sld [smem:[#allocation18_spill]] }
  0x2d   : > { %1281 = dma.vmem_to_smem (!%p1578_p7), %s166_s30, 256, %s1490_s9, [#allocation4], %s1491_s10, %s1491_s10, %s1492_s11  }
  0x32   : > { %s190_s14 = sshll.u32 %s2387_s3, 4  ;;  %s191_s14 = int_to_ptr.vmem [resolvable:$true] %s190_s14 }
  0x33   : > { %s1384_s15 = scalar_lea.vmem %s191_s14, 16  ;;  %p1392_p5 = scmp.lt.s32.totalorder %s191_s14, %s191_s14 }
  0x34   : > { %p1385_p11 = scmp.ne.s32.totalorder %s191_s14, %s1384_s15  ;;  %p1393_p12 = scmp.lt.s32.totalorder %s1384_s15, %s1384_s15 }
  0x36   : > { %p1387_p1 = pnand %p1385_p11, %p1356_p9  ;;  %p1394_p13 = por %p1393_p12, %p1392_p5 }
  0x38   : > { %p1388_p4 = pneg %p1387_p1 }
  0x3a   : > { %p1395_p0 = pnand %p1394_p13, %p1388_p4 }
  0x3c   : > { %1398 = shalt.err (!%p1395_p0)
}
  0x3d   : > { %s1493_s21 = smov [#allocation8]   ;;  %s31_s24 = sadd.s32 1, %s1483_s19 }
  0x3e   : > { %1287 = dma.vmem_to_smem (!%p1578_p7), %s191_s14, 16, %s1493_s21, [#allocation7]  }
  0x3f   : > { %p45_p9 = scmp.ne.s32.totalorder %s1475_s17, %s1471_s16  ;;  %p33_p2 = scmp.ge.s32.totalorder %s31_s24, 2 }
  0x40   : > { %p46_p3 = scmp.eq.s32.totalorder %s1487_s20, 0  ;;  %s38_s25 = sadd.s32 1, %s1475_s17 }
  0x41   : > { %s201_s26 = sand.u32 1, %s1475_s17   ;;  %s2404_s24 = smov (%p33_p2, %s31_s24), 0 }
  0x42   : > { %2388 = sst [smem:[#allocation13_spill]] %s2404_s24  ;;  %p47_p6 = por %p46_p3, %p45_p9 }
  0x43   : > { %p1295_p8 = scmp.lt.s32.totalorder %s1487_s20, 2  ;;  %s35_s28 = ssub.s32 %s1483_s19, %s2404_s24 }
  0x44   : > { %s1163_s29 = sshll.u32 %s201_s26, 6  ;;  %p36_p10 = scmp.eq.s32.totalorder %s35_s28, 0 }
  0x45   : > { %s1262_s30 = sshll.u32 %s1483_s19, 10  ;;  %s205_s5 = scalar_lea.vmem [#allocation2], %s1163_s29 }
  0x46   : > { %s212_s6 = sshll.u32 %s205_s5, 4  ;;  %s2390_s0 = sld [smem:[#allocation15_spill]]  ;;  %s1625_s6 = int_to_ptr.vmem [resolvable:$true] %s212_s6 }
  0x47   : > { %s1618_s7 = scalar_select %p36_p10, %s1475_s17, %s38_s25  }
  0x48   : > { %p1627_p7 = pnand %p1295_p8, %p47_p6  ;;  %s1631_s14 = scalar_lea.sflag [#allocation3], %s201_s26 }
  0x49   : > { %2389 = sst [smem:[#allocation14_spill]] %s1618_s7 }
  0x4a   : > { %p1401_p1 = pneg %p1627_p7 }
  0x4c   : > { %s1623_s12 = scalar_lea.hbm %s2390_s0, %s1262_s30  ;;  %s1404_s28 = scalar_lea.hbm %s2390_s0, 2048 }
  0x4d   : > { %s1399_s15 = scalar_lea.hbm %s1623_s12, 1024  ;;  %p1405_p12 = scmp.lt.u32.totalorder %s1623_s12, %s2390_s0 }
  0x4e   : > { %p1400_p11 = scmp.ne.s32.totalorder %s1623_s12, %s1399_s15  ;;  %p1406_p13 = scmp.lt.u32.totalorder %s1404_s28, %s1399_s15 }
  0x4f   : > { %p1408_p9 = scmp.lt.u32.totalorder %s1399_s15, %s1623_s12 }
  0x50   : > { %p1402_p4 = pnand %p1401_p1, %p1400_p11  ;;  %p1407_p0 = por %p1406_p13, %p1405_p12 }
  0x52   : > { %p1403_p5 = pneg %p1402_p4  ;;  %p1409_p2 = por %p1408_p9, %p1407_p0 }
  0x54   : > { %p1410_p3 = pnand %p1409_p2, %p1403_p5 }
  0x56   : > { %1413 = shalt.err (!%p1410_p3)
}
  0x57   : > { %s1414_s26 = scalar_lea.vmem %s1625_s6, 1024  ;;  %s1494_s5 = smov [#allocation2]  }
  0x58   : > { %p1415_p6 = scmp.ne.s32.totalorder %s1625_s6, %s1414_s26  ;;  %s1419_s8 = sshll.u32 %s1494_s5, 4  ;;  %s1420_s8 = int_to_ptr.vmem [resolvable:$false] %s1419_s8 }
  0x59   : > { %s1421_s9 = scalar_lea.vmem %s1420_s8, 2048  ;;  %p1422_p11 = scmp.lt.s32.totalorder %s1625_s6, %s1420_s8 }
  0x5a   : > { %p1417_p8 = pnand %p1415_p6, %p1401_p1  ;;  %p1423_p4 = scmp.lt.s32.totalorder %s1421_s9, %s1414_s26 }
  0x5c   : > { %p1418_p10 = pneg %p1417_p8  ;;  %p1424_p12 = por %p1423_p4, %p1422_p11 }
  0x5e   : > { %p1425_p13 = pnand %p1424_p12, %p1418_p10 }
  0x60   : > { %1428 = shalt.err (!%p1425_p13)
}
  0x61   : > { %1291 = dma.hbm_to_vmem [thread:$0]  (!%p1627_p7), %s1623_s12, 1024, %s1625_s6, %s1631_s14, %s1491_s10, %s1491_s10, %s1492_s11  }
  0x62   : > { %p2392_p1 = scmp.ne.s32.totalorder %s2384_s27, 0 }
  0x63   : > { %s226_s15 = sand.u32 (!%p2392_p1), 1, %s1471_s16   ;;  %p2393_p5 = scmp.ne.s32.totalorder (!%p2392_p1), %s2382_s23, 0 }
  0x64   : > { %224 = sbr.rel (%p2392_p1) target bundleno = 357 (0x165), region = 36  ;;  %s1167_s21 = sshll.u32 (!%p2392_p1), %s226_s15, 6 }
  0x65   : > { %s227_s25 = scalar_lea.sflag (!%p2392_p1), [#allocation3], %s226_s15  ;;  %s1665_s28 = scalar_lea.vmem (!%p2392_p1), [#allocation2], %s1167_s21 }
  0x6b   : > { %1454 = dma.done.wait (%p2393_p5), %s227_s25, 1024  }
  0x6c   : > { %1456 = vsyncadd (%p2393_p5), %s227_s25, 4294966272  ;;  %p2394_p0 = scmp.ne.s32.totalorder %s2381_s22, 0 }
  0x6e   : > { %1458 = dma.done.wait (%p2394_p0), [#allocation4], 256  }
  0x6f   : > { %1460 = vsyncadd (%p2394_p0), [#allocation4], 4294967040 }
  0x70   : > { %1462 = dma.done.wait (%p2394_p0), [#allocation7], 80  }
  0x71   : > { %1464 = vsyncadd (%p2394_p0), [#allocation7], 4294967216 }
  0x72   : > { %247 = sfence }
  0x73   : > { %s1174_s27 = sld [smem:[#allocation5 + $0x100]]  ;;  %s1182_s23 = sld [smem:[#allocation5 + $0x81]]  ;;  %v1680_v0 = vld [vmem:[%s1665_s28] sm:$0xff]  ;;  %v1683_v1 = vld [vmem:[%s1665_s28 + $0x8] sm:$0xff]  ;;  %v1694_v11 = vld [vmem:[%s1665_s28 + $0x10] sm:$0xff]  ;;  %vm330_vm0 = vcmask 1046528  }
  0x74   : > { %s1173_s10 = sld [smem:[#allocation5 + $0x80]]  ;;  %s1495_s22 = smov 126   ;;  %v1700_v15 = vld [vmem:[%s1665_s28 + $0x18] sm:$0xff]  ;;  %v1715_v22 = vld [vmem:[%s1665_s28 + $0x28] sm:$0xff]  ;;  %v1722_v24 = vld [vmem:[%s1665_s28 + $0x20] sm:$0xff]  ;;  %vm378_vm1 = vcmask 1045504  }
  0x75   : > { %s1176_s11 = sld [smem:[#allocation5 + $0x200]]  ;;  %s1496_s6 = smov 127   ;;  %v1748_v36 = vld [vmem:[%s1665_s28 + $0x38] sm:$0xff]  ;;  %v1753_v39 = vld [vmem:[%s1665_s28 + $0x30] sm:$0xff]  ;;  %vm826_vm2 = vcmask 111616   ;;  %vm824_vm3 = vcmask 113664  }
  0x76   : > { %s1183_s12 = sld [smem:[#allocation5 + $0x101]]  ;;  %s1191_s13 = sld [smem:[#allocation5 + $0x82]] }
  0x77   : > { %s1180_s14 = sld [smem:[#allocation5 + $0x400]]  ;;  %s1705_s29 = sld [smem:[#allocation5 + $0x102]] }
  0x78   : > { %s1708_s30 = sld [smem:[#allocation5 + $0x201]]  ;;  %s1717_s26 = sld [smem:[#allocation5 + $0x83]] }
  0x79   : > { %v311_v2 = vstv %s1174_s27  ;;  %v425_v12 = vstv %s1182_s23  ;;  %s1719_s5 = sld [smem:[#allocation5 + $0x280]]  ;;  %s1726_s8 = sld [smem:[#allocation5 + $0x281]] }
  0x7a   : > { %v312_v3 = vmul.f32 %v311_v2, %v1680_v0  ;;  %v297_v4 = vstv %s1173_s10  ;;  %v313_v7 = vmul.f32 %v311_v2, %v1683_v1  ;;  %v426_v14 = vmul.f32 %v425_v12, %v1694_v11  ;;  %s1731_s9 = sld [smem:[#allocation5 + $0x103]]  ;;  %s1738_s15 = sld [smem:[#allocation5 + $0x180]] }
  0x7b   : > { %v298_v5 = vmul.f32 %v297_v4, %v1680_v0  ;;  %v339_v6 = vstv %s1176_s11  ;;  %v299_v9 = vmul.f32 %v297_v4, %v1683_v1  ;;  %v427_v17 = vmul.f32 %v425_v12, %v1700_v15  ;;  %s1742_s21 = sld [smem:[#allocation5 + $0x202]]  ;;  %s1771_s28 = sld [smem:[#allocation5 + $0x181]] }
  0x7c   : > { %316 = vrot.lane.b32.xlu1 %v312_v3, %s1495_s22  ;;  %v341_v8 = vmul.f32 %v339_v6, %v1683_v1  ;;  %v340_v10 = vmul.f32 %v339_v6, %v1680_v0  ;;  %v439_v18 = vstv %s1183_s12  ;;  %v551_v23 = vstv %s1191_s13  ;;  %s1757_s25 = sld [smem:[#allocation5 + $0x282]]  ;;  %s1777_s10 = sld [smem:[#allocation5 + $0x183]] }
  0x7d   : > { %302 = vrot.lane.b32.xlu0 %v298_v5, %s1496_s6  ;;  %v441_v20 = vmul.f32 %v439_v18, %v1700_v15  ;;  %v440_v21 = vmul.f32 %v439_v18, %v1694_v11  ;;  %v553_v25 = vmul.f32 %v551_v23, %v1715_v22  ;;  %v404_v26 = vstv %s1180_s14  ;;  %s1773_s27 = sld [smem:[#allocation5 + $0x182]]  ;;  %s1780_s11 = sld [smem:[#allocation5 + $0x300]] }
  0x7e   : > { %v345_v13 = vrot.slane %v341_v8, 1  ;;  %v344_v16 = vrot.slane %v340_v10, 1  ;;  %v552_v27 = vmul.f32 %v551_v23, %v1722_v24  ;;  %v565_v28 = vstv %s1705_s29  ;;  %s1782_s23 = sld [smem:[#allocation5 + $0x301]]  ;;  %s1823_s12 = sld [smem:[#allocation5 + $0x203]] }
  0x7f   : > { %v405_v29 = vmul.f32 %v404_v26, %v1680_v0  ;;  %v1735_v30 = vmul.f32 %v404_v26, %v1683_v1  ;;  %v466_v31 = vstv %s1708_s30  ;;  %v567_v32 = vmul.f32 %v565_v28, %v1715_v22  ;;  %s1196_s13 = sld [smem:[#allocation5 + $0x302]]  ;;  %s1859_s14 = sld [smem:[#allocation5 + $0x380]] }
  0x80   : > { %318 = vrot.lane.b32.xlu1 %v313_v7, %s1495_s22  ;;  %v346_v19 = vsel %vm330_vm0, %v344_v16, %v345_v13  ;;  %v566_v35 = vmul.f32 %v565_v28, %v1722_v24  ;;  %v677_v37 = vstv %s1717_s26  ;;  %v356_v38 = vstv %s1719_s5  ;;  %s1876_s29 = sld [smem:[#allocation5 + $0x381]]  ;;  %s1204_s30 = sld [smem:[#allocation5 + $0x283]] }
  0x81   : > { %304 = vrot.lane.b32.xlu0 %v299_v9, %s1496_s6  ;;  %v410_v33 = vrot.slane %v1735_v30, 2  ;;  %v409_v34 = vrot.slane %v405_v29, 2  ;;  %v467_v40 = vmul.f32 %v466_v31, %v1694_v11  ;;  %v468_v41 = vmul.f32 %v466_v31, %v1700_v15  ;;  %s1189_s26 = sld [smem:[#allocation5 + $0x401]]  ;;  %s1197_s5 = sld [smem:[#allocation5 + $0x382]] }
  0x82   : > { %v679_v43 = vmul.f32 %v677_v37, %v1748_v36  ;;  %v357_v44 = vmul.f32 %v356_v38, %v1680_v0  ;;  %v1768_v45 = vmul.f32 %v356_v38, %v1683_v1  ;;  %v483_v46 = vstv %s1726_s8  ;;  %s1205_s8 = sld [smem:[#allocation5 + $0x303]]  ;;  %s2063_s1 = sld [smem:[#allocation6 + $0x104]] }
  0x83   : > { %v1762_v42 = vsel %vm378_vm1, %v409_v34, %v410_v33  ;;  %v678_v47 = vmul.f32 %v677_v37, %v1753_v39  ;;  %v472_v48 = vrot.slane %v468_v41, 1  ;;  %v471_v49 = vrot.slane %v467_v40, 1  ;;  %s2061_s0 = sld [smem:[#allocation6 + $0x103]]  ;;  %s2069_s2 = sld [smem:[#allocation6 + $0x105]] }
  0x84   : > { %349 = vrot.lane.b32.xlu1 %v345_v13, %s1496_s6  ;;  %v691_v50 = vstv %s1731_s9  ;;  %v1785_v51 = vmul.f32 %v483_v46, %v1694_v11  ;;  %v1788_v52 = vmul.f32 %v483_v46, %v1700_v15  ;;  %v325_v53 = vstv %s1738_s15  ;;  %s1198_s9 = sld [smem:[#allocation5 + $0x402]]  ;;  %s1206_s15 = sld [smem:[#allocation5 + $0x383]] }
  0x85   : > { %430 = vrot.lane.b32.xlu0 %v426_v14, %s1496_s6  ;;  %v362_v54 = vrot.slane %v1768_v45, 1  ;;  %v361_v55 = vrot.slane %v357_v44, 1  ;;  %v592_v56 = vstv %s1742_s21  ;;  %v326_v57 = vmul.f32 %v325_v53, %v1680_v0  ;;  %s1207_s21 = sld [smem:[#allocation5 + $0x403]]  ;;  %s2071_s3 = sld [smem:[#allocation6 + $0x106]] }
  0x86   : > { %v693_v58 = vmul.f32 %v691_v50, %v1748_v36  ;;  %v1798_v59 = vmul.f32 %v325_v53, %v1683_v1  ;;  %v473_v60 = vsel %vm330_vm0, %v471_v49, %v472_v48  ;;  %v692_v61 = vmul.f32 %v691_v50, %v1753_v39  ;;  %s2078_s24 = sld [smem:[#allocation6 + $0x107]]  ;;  %s2080_s19 = sld [smem:[#allocation6 + $0x180]] }
  0x87   : > { %v609_v62 = vstv %s1757_s25  ;;  %v331_v63 = vrot.slane %v326_v57, 1  ;;  %v489_v2 = vrot.slane %v1788_v52, 1  ;;  %v488_v3 = vrot.slane %v1785_v51, 1  ;;  %s292_s25 = sld [smem:[#allocation5]]  ;;  %s2180_s7 = sld [smem:[#allocation8 + $0x4]] }
  0x88   : > { %432 = vrot.lane.b32.xlu1 %v427_v17, %s1496_s6  ;;  %v593_v4 = vmul.f32 %v592_v56, %v1722_v24  ;;  %v332_v5 = vrot.slane %v1798_v59, 1  ;;  %v363_v6 = vsel %vm330_vm0, %v361_v55, %v362_v54  ;;  %v594_v7 = vmul.f32 %v592_v56, %v1715_v22  ;;  %p273_p7 = scmp.lt.s32.totalorder %s1479_s18, 1 }
  0x89   : > { %347 = vrot.lane.b32.xlu0 %v346_v19, %s1496_s6  ;;  %v453_v8 = vstv %s1771_s28  ;;  %v579_v9 = vstv %s1773_s27  ;;  %v705_v17 = vstv %s1777_s10  ;;  %v611_v49 = vmul.f32 %v609_v62, %v1715_v22  ;;  %s1965_s28 = sld [smem:[#allocation5 + $0x1]]  ;;  %s2010_s27 = sld [smem:[#allocation6]] }
  0x8a   : > { %v1816_v10 = vsel %vm330_vm0, %v331_v63, %v332_v5  ;;  %v454_v12 = vmul.f32 %v453_v8, %v1694_v11  ;;  %v1820_v13 = vmul.f32 %v453_v8, %v1700_v15  ;;  %v580_v14 = vmul.f32 %v579_v9, %v1722_v24  ;;  %s2012_s10 = sld [smem:[#allocation6 + $0x1]]  ;;  %s2406_s18 = smov (!%p273_p7, %s1479_s18), 1 }
  0x8b   : > { %v1826_v16 = vmul.f32 %v579_v9, %v1715_v22  ;;  %v373_v18 = vstv %s1780_s11  ;;  %v500_v19 = vstv %s1782_s23  ;;  %v490_v51 = vsel %vm330_vm0, %v488_v3, %v489_v2  ;;  %s2016_s11 = sld [smem:[#allocation6 + $0x2]]  ;;  %s2018_s23 = sld [smem:[#allocation6 + $0x3]] }
  0x8c   : > { %446 = vrot.lane.b32.xlu1 %v441_v20, %s1495_s22  ;;  %v458_v20 = vrot.slane %v454_v12, 1  ;;  %v584_v23 = vrot.slane %v580_v14, 1  ;;  %v374_v28 = vmul.f32 %v373_v18, %v1680_v0  ;;  %v1840_v29 = vmul.f32 %v373_v18, %v1683_v1 }
  0x8d   : > { %444 = vrot.lane.b32.xlu0 %v440_v21, %s1495_s22  ;;  %v459_v21 = vrot.slane %v1820_v13, 1  ;;  %v585_v26 = vrot.slane %v1826_v16, 1  ;;  %v501_v34 = vmul.f32 %v500_v19, %v1694_v11  ;;  %v598_v52 = vrot.slane %v594_v7, 1 }
  0x8e   : > { %v379_v40 = vrot.slane %v374_v28, 2  ;;  %v380_v41 = vrot.slane %v1840_v29, 2  ;;  %v718_v53 = vstv %s1823_s12  ;;  %v513_v7 = vstv %s1876_s29  ;;  %s2024_s12 = sld [smem:[#allocation6 + $0x4]]  ;;  %s2030_s29 = sld [smem:[#allocation6 + $0x7]] }
  0x8f   : > { %v1846_v31 = vsel %vm330_vm0, %v458_v20, %v459_v21  ;;  %v1855_v37 = vsel %vm330_vm0, %v584_v23, %v585_v26  ;;  %v719_v57 = vmul.f32 %v718_v53, %v1753_v39  ;;  %v720_v3 = vmul.f32 %v718_v53, %v1748_v36 }
  0x90   : > { %558 = vrot.lane.b32.xlu1 %v553_v25, %s1496_s6  ;;  %v706_v25 = vmul.f32 %v705_v17, %v1753_v39  ;;  %v1871_v46 = vsel %vm378_vm1, %v379_v40, %v380_v41  ;;  %v514_v23 = vmul.f32 %v513_v7, %v1694_v11  ;;  %v639_v53 = vstv %s1197_s5  ;;  %s2036_s5 = sld [smem:[#allocation6 + $0x82]] }
  0x91   : > { %556 = vrot.lane.b32.xlu0 %v552_v27, %s1496_s6  ;;  %v1836_v27 = vmul.f32 %v705_v17, %v1748_v36  ;;  %v724_v9 = vrot.slane %v720_v3, 1  ;;  %v515_v17 = vmul.f32 %v513_v7, %v1700_v15  ;;  %v640_v3 = vmul.f32 %v639_v53, %v1722_v24 }
  0x93   : > { %v711_v38 = vrot.slane %v1836_v27, 1  ;;  %v519_v28 = vrot.slane %v515_v17, 2  ;;  %v926_v27 = vstv %s2063_s1 }
  0x94   : > { %572 = vrot.lane.b32.xlu1 %v567_v32, %s1495_s22  ;;  %v710_v32 = vrot.slane %v706_v25, 1  ;;  %v735_v25 = vstv %s1204_s30  ;;  %s2032_s30 = sld [smem:[#allocation6 + $0x80]] }
  0x95   : > { %570 = vrot.lane.b32.xlu0 %v566_v35, %s1495_s22  ;;  %v1850_v35 = vmul.f32 %v500_v19, %v1700_v15  ;;  %v736_v40 = vmul.f32 %v735_v25, %v1753_v39 }
  0x96   : > { %v1866_v45 = vsel %vm330_vm0, %v710_v32, %v711_v38 }
  0x97   : > { %v506_v44 = vrot.slane %v1850_v35, 2 }
  0x98   : > { %684 = vrot.lane.b32.xlu1 %v679_v43, %s1496_s6  ;;  %v505_v43 = vrot.slane %v501_v34, 2  ;;  %v518_v34 = vrot.slane %v514_v23, 2 }
  0x99   : > { %682 = vrot.lane.b32.xlu0 %v678_v47, %s1496_s6  ;;  %v597_v47 = vrot.slane %v593_v4, 1  ;;  %v387_v4 = vstv %s1859_s14  ;;  %s2028_s14 = sld [smem:[#allocation6 + $0x6]] }
  0x9a   : > { %v1881_v50 = vsel %vm378_vm1, %v505_v43, %v506_v44  ;;  %v388_v12 = vmul.f32 %v387_v4, %v1680_v0  ;;  %v389_v14 = vmul.f32 %v387_v4, %v1683_v1  ;;  %v737_v43 = vmul.f32 %v735_v25, %v1748_v36 }
  0x9b   : > { %v641_v4 = vmul.f32 %v639_v53, %v1715_v22  ;;  %v782_v25 = vstv %s1207_s21  ;;  %v293_v53 = vstv %s292_s25  ;;  %s2045_s21 = sld [smem:[#allocation6 + $0x86]]  ;;  %s2047_s25 = sld [smem:[#allocation6 + $0x87]] }
  0x9c   : > { %476 = vrot.lane.b32.xlu1 %v472_v48, %s1496_s6  ;;  %v610_v48 = vmul.f32 %v609_v62, %v1722_v24  ;;  %v615_v62 = vrot.slane %v611_v49, 1  ;;  %v393_v19 = vrot.slane %v389_v14, 2  ;;  %v392_v20 = vrot.slane %v388_v12, 2 }
  0x9d   : > { %474 = vrot.lane.b32.xlu0 %v473_v60, %s1496_s6  ;;  %v740_v49 = vrot.slane %v736_v40, 1  ;;  %v645_v17 = vrot.slane %v641_v4, 2 }
  0x9e   : > { %v614_v63 = vrot.slane %v610_v48, 1  ;;  %v394_v32 = vsel %vm378_vm1, %v392_v20, %v393_v19  ;;  %v741_v48 = vrot.slane %v737_v43, 1  ;;  %v765_v20 = vstv %s1206_s15  ;;  %s2042_s15 = sld [smem:[#allocation6 + $0x85]] }
  0xa0   : > { %698 = vrot.lane.b32.xlu1 %v693_v58, %s1495_s22  ;;  %v616_v8 = vsel %vm330_vm0, %v614_v63, %v615_v62 }
  0xa1   : > { %696 = vrot.lane.b32.xlu0 %v692_v61, %s1495_s22  ;;  %v599_v61 = vsel %vm330_vm0, %v597_v47, %v598_v52  ;;  %v520_v47 = vsel %vm378_vm1, %v518_v34, %v519_v28 }
  0xa4   : > { %366 = vrot.lane.b32.xlu1 %v362_v54, %s1495_s22  ;;  %v626_v54 = vstv %s1196_s13  ;;  %s2026_s13 = sld [smem:[#allocation6 + $0x5]] }
  0xa5   : > { %364 = vrot.lane.b32.xlu0 %v363_v6, %s1495_s22  ;;  %v627_v55 = vmul.f32 %v626_v54, %v1722_v24  ;;  %v1887_v56 = vmul.f32 %v626_v54, %v1715_v22  ;;  %v723_v6 = vrot.slane %v719_v57, 1  ;;  %v752_v54 = vstv %s1205_s8  ;;  %s2038_s8 = sld [smem:[#allocation6 + $0x83]] }
  0xa7   : > { %v631_v58 = vrot.slane %v627_v55, 2  ;;  %v632_v60 = vrot.slane %v1887_v56, 2  ;;  %v725_v18 = vsel %vm330_vm0, %v723_v6, %v724_v9  ;;  %v742_v55 = vsel %vm330_vm0, %v740_v49, %v741_v48 }
  0xa8   : > { %493 = vrot.lane.b32.xlu1 %v489_v2, %s1495_s22 }
  0xa9   : > { %491 = vrot.lane.b32.xlu0 %v490_v51, %s1495_s22  ;;  %v1900_v2 = vsel %vm378_vm1, %v631_v58, %v632_v60  ;;  %v530_v51 = vstv %s1189_s26  ;;  %v753_v58 = vmul.f32 %v752_v54, %v1753_v39  ;;  %s2034_s26 = sld [smem:[#allocation6 + $0x81]] }
  0xaa   : > { %v532_v57 = vmul.f32 %v530_v51, %v1700_v15 }
  0xac   : > { %602 = vrot.lane.b32.xlu1 %v598_v52, %s1496_s6  ;;  %v531_v52 = vmul.f32 %v530_v51, %v1694_v11  ;;  %v536_v6 = vrot.slane %v532_v57, 2 }
  0xad   : > { %600 = vrot.lane.b32.xlu0 %v599_v61, %s1496_s6  ;;  %v1927_v61 = vmul.f32 %v752_v54, %v1748_v36  ;;  %v294_v54 = vmul.f32 %v293_v53, %v1680_v0 }
  0xae   : > { %v535_v7 = vrot.slane %v531_v52, 2 }
  0xaf   : > { %v758_v63 = vrot.slane %v1927_v61, 2 }
  0xb0   : > { %619 = vrot.lane.b32.xlu1 %v615_v62, %s1495_s22  ;;  %v757_v62 = vrot.slane %v753_v58, 2  ;;  %v537_v14 = vsel %vm378_vm1, %v535_v7, %v536_v6 }
  0xb1   : > { %617 = vrot.lane.b32.xlu0 %v616_v8, %s1495_s22  ;;  %v656_v8 = vstv %s1198_s9  ;;  %s2040_s9 = sld [smem:[#allocation6 + $0x84]] }
  0xb2   : > { %v657_v12 = vmul.f32 %v656_v8, %v1722_v24 }
  0xb4   : > { %728 = vrot.lane.b32.xlu1 %v724_v9, %s1496_s6  ;;  %v1937_v9 = vsel %vm378_vm1, %v757_v62, %v758_v63  ;;  %v661_v23 = vrot.slane %v657_v12, 2  ;;  %v295_v62 = vmul.f32 %v293_v53, %v1683_v1 }
  0xb5   : > { %726 = vrot.lane.b32.xlu0 %v725_v18, %s1496_s6  ;;  %v644_v18 = vrot.slane %v640_v3, 2  ;;  %v421_v3 = vstv %s1965_s28  ;;  %s2049_s28 = sld [smem:[#allocation6 + $0x100]] }
  0xb6   : > { %v422_v12 = vmul.f32 %v421_v3, %v1694_v11 }
  0xb7   : > { %v646_v30 = vsel %vm378_vm1, %v644_v18, %v645_v17 }
  0xb8   : > { %397 = vrot.lane.b32.xlu1 %v393_v19, %s1496_s6  ;;  %v658_v19 = vmul.f32 %v656_v8, %v1715_v22 }
  0xb9   : > { %395 = vrot.lane.b32.xlu0 %v394_v32, %s1496_s6  ;;  %v783_v32 = vmul.f32 %v782_v25, %v1753_v39 }
  0xbb   : > { %v787_v51 = vrot.slane %v783_v32, 2 }
  0xbc   : > { %523 = vrot.lane.b32.xlu1 %v519_v28, %s1496_s6  ;;  %v767_v28 = vmul.f32 %v765_v20, %v1748_v36 }
  0xbd   : > { %521 = vrot.lane.b32.xlu0 %v520_v47, %s1496_s6  ;;  %v784_v47 = vmul.f32 %v782_v25, %v1748_v36 }
  0xbe   : > { %v771_v40 = vrot.slane %v767_v28, 2 }
  0xbf   : > { %v788_v49 = vrot.slane %v784_v47, 2 }
  0xc0   : > { %745 = vrot.lane.b32.xlu1 %v741_v48, %s1495_s22 }
  0xc1   : > { %743 = vrot.lane.b32.xlu0 %v742_v55, %s1495_s22  ;;  %v789_v52 = vsel %vm378_vm1, %v787_v51, %v788_v49 }
  0xc4   : > { %414 = vrot.lane.b32.xlu1 %v410_v33, %s1495_s22  ;;  %v662_v33 = vrot.slane %v658_v19, 2 }
  0xc5   : > { %412 = vrot.lane.b32.xlu0 %v1762_v42, %s1495_s22  ;;  %v766_v42 = vmul.f32 %v765_v20, %v1753_v39 }
  0xc6   : > { %v663_v34 = vsel %vm378_vm1, %v661_v23, %v662_v33 }
  0xc7   : > { %v770_v43 = vrot.slane %v766_v42, 2 }
  0xc8   : > { %540 = vrot.lane.b32.xlu1 %v536_v6, %s1495_s22 }
  0xc9   : > { %538 = vrot.lane.b32.xlu0 %v537_v14, %s1495_s22  ;;  %v772_v48 = vsel %vm378_vm1, %v770_v43, %v771_v40 }
  0xcc   : > { %649 = vrot.lane.b32.xlu1 %v645_v17, %s1496_s6 }
  0xcd   : > { %647 = vrot.lane.b32.xlu0 %v646_v30, %s1496_s6 }
  0xd0   : > { %666 = vrot.lane.b32.xlu1 %v662_v33, %s1495_s22 }
  0xd1   : > { %664 = vrot.lane.b32.xlu0 %v663_v34, %s1495_s22 }
  0xd4   : > { %775 = vrot.lane.b32.xlu1 %v771_v40, %s1496_s6 }
  0xd5   : > { %773 = vrot.lane.b32.xlu0 %v772_v48, %s1496_s6  ;;  %s1979_s6 = sld [smem:[#allocation5 + $0x3]] }
  0xd8   : > { %792 = vrot.lane.b32.xlu1 %v788_v49, %s1495_s22 }
  0xd9   : > { %790 = vrot.lane.b32.xlu0 %v789_v52, %s1495_s22  ;;  %s1972_s22 = sld [smem:[#allocation5 + $0x2]] }
  0xdb   : > { %v673_v51 = vstv %s1979_s6  ;;  %s2054_s6 = sld [smem:[#allocation6 + $0x102]] }
  0xdc   : > { %v674_v53 = vmul.f32 %v673_v51, %v1753_v39 }
  0xdf   : > { %v547_v28 = vstv %s1972_s22  ;;  %s2051_s22 = sld [smem:[#allocation6 + $0x101]] }
  0xee   : > { %v317_v55 = vpop.permute.xlu1 %316 }
  0xef   : > { %v303_v57 = vpop.permute.xlu0 %302 }
  0xf0   : > { %v308_v58 = vadd.f32 %v303_v57, %v294_v54 }
  0xf2   : > { %v322_v4 = vadd.f32 %v317_v55, %v308_v58  ;;  %v319_v6 = vpop.permute.xlu1 %318 }
  0xf3   : > { %v305_v7 = vpop.permute.xlu0 %304 }
  0xf4   : > { %v309_v8 = vadd.f32 %v305_v7, %v295_v62  ;;  %v336_v14 = vadd.f32 %v1816_v10, %v322_v4  ;;  %v548_v10 = vmul.f32 %v547_v28, %v1722_v24 }
  0xf6   : > { %v323_v17 = vadd.f32 %v319_v6, %v309_v8  ;;  %v350_v18 = vpop.permute.xlu1 %349 }
  0xf7   : > { %v431_v19 = vpop.permute.xlu0 %430 }
  0xf8   : > { %v337_v0 = vadd.f32 %v332_v5, %v323_v17  ;;  %v436_v20 = vadd.f32 %v431_v19, %v422_v12 }
  0xfa   : > { %v354_v1 = vadd.f32 %v350_v18, %v337_v0  ;;  %v433_v23 = vpop.permute.xlu1 %432 }
  0xfb   : > { %v348_v25 = vpop.permute.xlu0 %347 }
  0xfc   : > { %v353_v30 = vadd.f32 %v348_v25, %v336_v14  ;;  %v423_v25 = vmul.f32 %v421_v3, %v1700_v15 }
  0xfe   : > { %v447_v33 = vpop.permute.xlu1 %446  ;;  %v437_v15 = vadd.f32 %v433_v23, %v423_v25  ;;  %v675_v23 = vmul.f32 %v673_v51, %v1748_v36  ;;  %v1003_v51 = vstv %s2030_s29  ;;  %v897_v25 = vstv %s2061_s0  ;;  %s2178_s29 = sld [smem:[#allocation6 + $0x184]]  ;;  %s1263_s0 = sshll.u32 %s2406_s18, 7 }
  0xff   : > { %v445_v42 = vpop.permute.xlu0 %444 }
 0x100   : > { %v450_v11 = vadd.f32 %v445_v42, %v436_v20 }
 0x102   : > { %v559_v32 = vpop.permute.xlu1 %558  ;;  %v463_v34 = vadd.f32 %v1846_v31, %v450_v11 }
 0x103   : > { %v557_v40 = vpop.permute.xlu0 %556 }
 0x104   : > { %v562_v59 = vadd.f32 %v557_v40, %v548_v10  ;;  %v858_v40 = vstv %s2016_s11  ;;  %s2160_s11 = sld [smem:[#allocation8 + $0x1]] }
 0x106   : > { %v573_v5 = vpop.permute.xlu1 %572 }
 0x107   : > { %v571_v43 = vpop.permute.xlu0 %570 }
 0x108   : > { %v576_v47 = vadd.f32 %v571_v43, %v562_v59  ;;  %v887_v59 = vstv %s2018_s23  ;;  %v916_v43 = vstv %s2024_s12  ;;  %s2162_s23 = sld [smem:[#allocation6 + $0x182]] }
 0x109   : > { %s2172_s12 = sld [smem:[#allocation8 + $0x2]] }
 0x10a   : > { %v1981_v48 = vpop.permute.xlu1 %684  ;;  %v589_v49 = vadd.f32 %v1855_v37, %v576_v47  ;;  %v945_v47 = vstv %s2026_s13  ;;  %s2174_s13 = sld [smem:[#allocation6 + $0x183]] }
 0x10b   : > { %v683_v52 = vpop.permute.xlu0 %682 }
 0x10c   : > { %v688_v31 = vadd.f32 %v683_v52, %v674_v53  ;;  %v803_v52 = vstv %s2032_s30  ;;  %s2213_s30 = sld [smem:[#allocation6 + $0x185]] }
 0x10e   : > { %v1986_v54 = vpop.permute.xlu1 %476 }
 0x10f   : > { %v475_v24 = vpop.permute.xlu0 %474 }
 0x110   : > { %v480_v39 = vadd.f32 %v475_v24, %v463_v34  ;;  %v829_v34 = vstv %s2012_s10  ;;  %s2150_s10 = sld [smem:[#allocation6 + $0x181]] }
 0x112   : > { %v1988_v55 = vpop.permute.xlu1 %698 }
 0x113   : > { %v697_v57 = vpop.permute.xlu0 %696 }
 0x114   : > { %v702_v58 = vadd.f32 %v697_v57, %v688_v31  ;;  %v862_v31 = vstv %s2036_s5  ;;  %s2225_s5 = sld [smem:[#allocation6 + $0x186]] }
 0x116   : > { %v367_v62 = vpop.permute.xlu1 %366  ;;  %v1991_v4 = vadd.f32 %v1866_v45, %v702_v58  ;;  %v891_v58 = vstv %s2038_s8  ;;  %s2227_s8 = sld [smem:[#allocation6 + $0x187]] }
 0x117   : > { %v371_v6 = vadd.f32 %v367_v62, %v354_v1  ;;  %v365_v7 = vpop.permute.xlu0 %364  ;;  %v920_v62 = vstv %s2040_s9  ;;  %s2237_s9 = sld [smem:[#allocation8 + $0x6]] }
 0x118   : > { %v370_v8 = vadd.f32 %v365_v7, %v353_v30  ;;  %v549_v30 = vmul.f32 %v547_v28, %v1715_v22  ;;  %v451_v22 = vadd.f32 %v447_v33, %v437_v15  ;;  %v949_v7 = vstv %s2042_s15  ;;  %s2239_s15 = sld [smem:[#allocation8 + $0x7]] }
 0x119   : > { %v1995_v37 = vadd.f32 %v380_v41, %v371_v6  ;;  %v815_v15 = vstv %s2080_s19 }
 0x11a   : > { %v1997_v12 = vpop.permute.xlu1 %493  ;;  %v2000_v14 = vadd.f32 %v1871_v46, %v370_v8  ;;  %v464_v36 = vadd.f32 %v459_v21, %v451_v22  ;;  %v1007_v8 = vstv %s2047_s25 }
 0x11b   : > { %v492_v17 = vpop.permute.xlu0 %491 }
 0x11c   : > { %v497_v18 = vadd.f32 %v492_v17, %v480_v39  ;;  %v481_v13 = vadd.f32 %v1986_v54, %v464_v36  ;;  %v833_v54 = vstv %s2034_s26  ;;  %v809_v17 = vstv %s2049_s28  ;;  %s2215_s26 = sld [smem:[#allocation8 + $0x5]] }
 0x11e   : > { %v2002_v19 = vpop.permute.xlu1 %602  ;;  %v2005_v45 = vadd.f32 %v1881_v50, %v497_v18  ;;  %v498_v16 = vadd.f32 %v1997_v12, %v481_v13  ;;  %v839_v12 = vstv %s2051_s22 }
 0x11f   : > { %v601_v0 = vpop.permute.xlu0 %600 }
 0x120   : > { %v606_v20 = vadd.f32 %v601_v0, %v589_v49  ;;  %v974_v49 = vstv %s2028_s14  ;;  %s2176_s14 = sld [smem:[#allocation8 + $0x3]] }
 0x122   : > { %v2007_v1 = vpop.permute.xlu1 %619 }
 0x123   : > { %v618_v29 = vpop.permute.xlu0 %617 }
 0x124   : > { %v623_v41 = vadd.f32 %v618_v29, %v606_v20  ;;  %v868_v20 = vstv %s2054_s6 }
 0x126   : > { %v2014_v46 = vpop.permute.xlu1 %728  ;;  %v2021_v50 = vadd.f32 %v1900_v2, %v623_v41  ;;  %v563_v2 = vadd.f32 %v559_v32, %v549_v30  ;;  %v799_v32 = vstv %s2010_s27  ;;  %v955_v30 = vstv %s2069_s2  ;;  %s2148_s27 = sld [smem:[#allocation8]] }
 0x127   : > { %v727_v42 = vpop.permute.xlu0 %726 }
 0x128   : > { %v577_v11 = vadd.f32 %v573_v5, %v563_v2  ;;  %v689_v5 = vadd.f32 %v1981_v48, %v675_v23  ;;  %v732_v53 = vadd.f32 %v727_v42, %v1991_v4 }
 0x12a   : > { %v398_v3 = vpop.permute.xlu1 %397  ;;  %v590_v21 = vadd.f32 %v585_v26, %v577_v11  ;;  %v703_v48 = vadd.f32 %v1988_v55, %v689_v5  ;;  %v978_v55 = vstv %s2045_s21 }
 0x12b   : > { %v396_v28 = vpop.permute.xlu0 %395  ;;  %v402_v39 = vadd.f32 %v398_v3, %v1995_v37 }
 0x12c   : > { %v607_v26 = vadd.f32 %v2002_v19, %v590_v21  ;;  %v716_v18 = vadd.f32 %v711_v38, %v703_v48  ;;  %v401_v19 = vadd.f32 %v396_v28, %v2000_v14 }
 0x12e   : > { %v524_v33 = vpop.permute.xlu1 %523  ;;  %v624_v4 = vadd.f32 %v2007_v1, %v607_v26  ;;  %v511_v1 = vadd.f32 %v506_v44, %v498_v16  ;;  %v733_v38 = vadd.f32 %v2014_v46, %v716_v18  ;;  %v1013_v44 = vstv %s2078_s24 }
 0x12f   : > { %v522_v10 = vpop.permute.xlu0 %521 }
 0x130   : > { %v528_v42 = vadd.f32 %v524_v33, %v511_v1  ;;  %v2113_v35 = vadd.f32 %v632_v60, %v624_v4  ;;  %v527_v3 = vadd.f32 %v522_v10, %v2005_v45 }
 0x132   : > { %v746_v24 = vpop.permute.xlu1 %745 }
 0x133   : > { %v744_v57 = vpop.permute.xlu0 %743  ;;  %v2118_v46 = vadd.f32 %v746_v24, %v733_v38 }
 0x134   : > { %v749_v6 = vadd.f32 %v744_v57, %v732_v53 }
 0x136   : > { %v415_v0 = vpop.permute.xlu1 %414  ;;  %v2102_v29 = vadd.f32 %v1937_v9, %v749_v6  ;;  %v984_v9 = vstv %s2071_s3  ;;  %s2283_s3 = scalar_lea.vmem %s2369_s4, %s1263_s0 }
 0x137   : > { %v419_v37 = vadd.f32 %v415_v0, %v402_v39  ;;  %v413_v41 = vpop.permute.xlu0 %412 }
 0x138   : > { %v418_v14 = vadd.f32 %v413_v41, %v401_v19 }
 0x139   : > { %v801_v22 = vmul.f32 %v799_v32, %v419_v37  ;;  %v831_v2 = vmul.f32 %v829_v34, %v419_v37  ;;  %v860_v60 = vmul.f32 %v858_v40, %v419_v37  ;;  %v889_v28 = vmul.f32 %v887_v59, %v419_v37 }
 0x13a   : > { %v541_v56 = vpop.permute.xlu1 %540  ;;  %v918_v23 = vmul.f32 %v916_v43, %v419_v37  ;;  %v947_v11 = vmul.f32 %v945_v47, %v419_v37  ;;  %v976_v45 = vmul.f32 %v974_v49, %v419_v37  ;;  %v1005_v36 = vmul.f32 %v1003_v51, %v419_v37 }
 0x13b   : > { %v539_v33 = vpop.permute.xlu0 %538  ;;  %v800_v10 = vmul.f32 %v799_v32, %v418_v14  ;;  %v830_v5 = vmul.f32 %v829_v34, %v418_v14  ;;  %v859_v13 = vmul.f32 %v858_v40, %v418_v14  ;;  %v888_v21 = vmul.f32 %v887_v59, %v418_v14 }
 0x13c   : > { %v917_v48 = vmul.f32 %v916_v43, %v418_v14  ;;  %v545_v53 = vadd.f32 %v541_v56, %v528_v42  ;;  %v946_v24 = vmul.f32 %v945_v47, %v418_v14  ;;  %v975_v16 = vmul.f32 %v974_v49, %v418_v14 }
 0x13d   : > { %v1004_v26 = vmul.f32 %v1003_v51, %v418_v14  ;;  %v544_v32 = vadd.f32 %v539_v33, %v527_v3 }
 0x13e   : > { %v650_v57 = vpop.permute.xlu1 %649  ;;  %v805_v34 = vmul.f32 %v803_v52, %v545_v53  ;;  %v835_v40 = vmul.f32 %v833_v54, %v545_v53  ;;  %v864_v59 = vmul.f32 %v862_v31, %v545_v53  ;;  %v893_v43 = vmul.f32 %v891_v58, %v545_v53 }
 0x13f   : > { %v648_v47 = vpop.permute.xlu0 %647  ;;  %v922_v49 = vmul.f32 %v920_v62, %v545_v53  ;;  %v951_v51 = vmul.f32 %v949_v7, %v545_v53  ;;  %v980_v6 = vmul.f32 %v978_v55, %v545_v53  ;;  %v1009_v4 = vmul.f32 %v1007_v8, %v545_v53 }
 0x140   : > { %v807_v39 = vadd.f32 %v805_v34, %v801_v22  ;;  %v837_v18 = vadd.f32 %v835_v40, %v831_v2  ;;  %v866_v19 = vadd.f32 %v864_v59, %v860_v60  ;;  %v895_v0 = vadd.f32 %v893_v43, %v889_v28 }
 0x141   : > { %v924_v1 = vadd.f32 %v922_v49, %v918_v23  ;;  %v953_v37 = vadd.f32 %v951_v51, %v947_v11  ;;  %v982_v41 = vadd.f32 %v980_v6, %v976_v45  ;;  %v1011_v38 = vadd.f32 %v1009_v4, %v1005_v36 }
 0x142   : > { %v667_v14 = vpop.permute.xlu1 %666  ;;  %v804_v42 = vmul.f32 %v803_v52, %v544_v32  ;;  %v834_v3 = vmul.f32 %v833_v54, %v544_v32  ;;  %v863_v22 = vmul.f32 %v862_v31, %v544_v32  ;;  %v892_v2 = vmul.f32 %v891_v58, %v544_v32 }
 0x143   : > { %v665_v56 = vpop.permute.xlu0 %664  ;;  %v921_v60 = vmul.f32 %v920_v62, %v544_v32  ;;  %v950_v28 = vmul.f32 %v949_v7, %v544_v32  ;;  %v979_v23 = vmul.f32 %v978_v55, %v544_v32  ;;  %v1008_v11 = vmul.f32 %v1007_v8, %v544_v32 }
 0x144   : > { %v806_v33 = vadd.f32 %v804_v42, %v800_v10  ;;  %v836_v52 = vadd.f32 %v834_v3, %v830_v5  ;;  %v865_v54 = vadd.f32 %v863_v22, %v859_v13  ;;  %v894_v31 = vadd.f32 %v892_v2, %v888_v21 }
 0x145   : > { %v923_v58 = vadd.f32 %v921_v60, %v917_v48  ;;  %v952_v45 = vadd.f32 %v950_v28, %v946_v24  ;;  %v981_v62 = vadd.f32 %v979_v23, %v975_v16  ;;  %v1010_v36 = vadd.f32 %v1008_v11, %v1004_v26 }
 0x146   : > { %v654_v7 = vadd.f32 %v650_v57, %v2113_v35  ;;  %v776_v53 = vpop.permute.xlu1 %775  ;;  %v821_v34 = vstv %s2148_s27  ;;  %v845_v8 = vstv %s2150_s10  ;;  %v851_v10 = vstv %s2160_s11 }
 0x147   : > { %v774_v55 = vpop.permute.xlu0 %773  ;;  %v653_v5 = vadd.f32 %v648_v47, %v2021_v50  ;;  %v763_v13 = vadd.f32 %v758_v63, %v2118_v46  ;;  %v874_v21 = vstv %s2162_s23  ;;  %v880_v48 = vstv %s2172_s12 }
 0x148   : > { %v671_v24 = vadd.f32 %v667_v14, %v654_v7  ;;  %v903_v35 = vstv %s2174_s13  ;;  %v909_v16 = vstv %s2176_s14  ;;  %v932_v26 = vstv %s2178_s29 }
 0x149   : > { %v670_v32 = vadd.f32 %v665_v56, %v653_v5  ;;  %v780_v57 = vadd.f32 %v776_v53, %v763_v13  ;;  %v779_v50 = vadd.f32 %v774_v55, %v2102_v29  ;;  %v938_v40 = vstv %s2180_s7 }
 0x14a   : > { %v811_v61 = vmul.f32 %v809_v17, %v671_v24  ;;  %v841_v63 = vmul.f32 %v839_v12, %v671_v24  ;;  %v870_v46 = vmul.f32 %v868_v20, %v671_v24  ;;  %v899_v59 = vmul.f32 %v897_v25, %v671_v24 }
 0x14b   : > { %v928_v29 = vmul.f32 %v926_v27, %v671_v24  ;;  %v957_v43 = vmul.f32 %v955_v30, %v671_v24  ;;  %v986_v47 = vmul.f32 %v984_v9, %v671_v24  ;;  %v1015_v49 = vmul.f32 %v1013_v44, %v671_v24 }
 0x14c   : > { %v813_v51 = vadd.f32 %v811_v61, %v807_v39  ;;  %v843_v6 = vadd.f32 %v841_v63, %v837_v18  ;;  %v872_v4 = vadd.f32 %v870_v46, %v866_v19  ;;  %v901_v14 = vadd.f32 %v899_v59, %v895_v0 }
 0x14d   : > { %v930_v42 = vadd.f32 %v928_v29, %v924_v1  ;;  %v959_v3 = vadd.f32 %v957_v43, %v953_v37  ;;  %v988_v22 = vadd.f32 %v986_v47, %v982_v41  ;;  %v1017_v2 = vadd.f32 %v1015_v49, %v1011_v38 }
 0x14e   : > { %v810_v56 = vmul.f32 %v809_v17, %v670_v32  ;;  %v840_v60 = vmul.f32 %v839_v12, %v670_v32  ;;  %v869_v28 = vmul.f32 %v868_v20, %v670_v32  ;;  %v898_v23 = vmul.f32 %v897_v25, %v670_v32  ;;  %v793_v17 = vpop.permute.xlu1 %792 }
 0x14f   : > { %v927_v39 = vmul.f32 %v926_v27, %v670_v32  ;;  %v956_v18 = vmul.f32 %v955_v30, %v670_v32  ;;  %v985_v19 = vmul.f32 %v984_v9, %v670_v32  ;;  %v1014_v0 = vmul.f32 %v1013_v44, %v670_v32  ;;  %v791_v27 = vpop.permute.xlu0 %790 }
 0x150   : > { %v812_v12 = vadd.f32 %v810_v56, %v806_v33  ;;  %v842_v20 = vadd.f32 %v840_v60, %v836_v52  ;;  %v871_v1 = vadd.f32 %v869_v28, %v865_v54  ;;  %v900_v25 = vadd.f32 %v898_v23, %v894_v31 }
 0x151   : > { %v929_v30 = vadd.f32 %v927_v39, %v923_v58  ;;  %v958_v9 = vadd.f32 %v956_v18, %v952_v45  ;;  %v987_v44 = vadd.f32 %v985_v19, %v981_v62  ;;  %v1016_v37 = vadd.f32 %v1014_v0, %v1010_v36 }
 0x152   : > { %v961_v41 = vstv %s2213_s30  ;;  %v990_v38 = vstv %s2225_s5  ;;  %v1019_v11 = vstv %s2227_s8  ;;  %v797_v33 = vadd.f32 %v793_v17, %v780_v57 }
 0x153   : > { %v967_v52 = vstv %s2215_s26  ;;  %v996_v54 = vstv %s2237_s9  ;;  %v1025_v31 = vstv %s2239_s15  ;;  %v796_v7 = vadd.f32 %v791_v27, %v779_v50 }
 0x154   : > { %v817_v53 = vmul.f32 %v815_v15, %v797_v33  ;;  %v847_v55 = vmul.f32 %v845_v8, %v797_v33  ;;  %v876_v58 = vmul.f32 %v874_v21, %v797_v33  ;;  %v905_v45 = vmul.f32 %v903_v35, %v797_v33 }
 0x155   : > { %v934_v62 = vmul.f32 %v932_v26, %v797_v33  ;;  %v963_v36 = vmul.f32 %v961_v41, %v797_v33  ;;  %v992_v5 = vmul.f32 %v990_v38, %v797_v33  ;;  %v1021_v13 = vmul.f32 %v1019_v11, %v797_v33 }
 0x156   : > { %v819_v24 = vadd.f32 %v817_v53, %v813_v51  ;;  %v849_v32 = vadd.f32 %v847_v55, %v843_v6  ;;  %v878_v57 = vadd.f32 %v876_v58, %v872_v4  ;;  %v907_v50 = vadd.f32 %v905_v45, %v901_v14 }
 0x157   : > { %v936_v61 = vadd.f32 %v934_v62, %v930_v42  ;;  %v965_v63 = vadd.f32 %v963_v36, %v959_v3  ;;  %v994_v46 = vadd.f32 %v992_v5, %v988_v22  ;;  %v1023_v59 = vadd.f32 %v1021_v13, %v1017_v2 }
 0x158   : > { %v823_v29 = vadd.f32 %v821_v34, %v819_v24  ;;  %v853_v43 = vadd.f32 %v851_v10, %v849_v32  ;;  %v882_v47 = vadd.f32 %v880_v48, %v878_v57  ;;  %v911_v49 = vadd.f32 %v909_v16, %v907_v50 }
 0x159   : > { %v940_v51 = vadd.f32 %v938_v40, %v936_v61  ;;  %v969_v6 = vadd.f32 %v967_v52, %v965_v63  ;;  %v998_v4 = vadd.f32 %v996_v54, %v994_v46  ;;  %v1027_v14 = vadd.f32 %v1025_v31, %v1023_v59 }
 0x15a   : > { %827 = vst.msk [vmem:[%s2283_s3 + $0x8] sm:$0x3f] %vm826_vm2, %v823_v29  ;;  %1217 = vst.msk [vmem:[%s2283_s3 + $0x18] sm:$0x3f] %vm826_vm2, %v853_v43  ;;  %v816_v42 = vmul.f32 %v815_v15, %v796_v7  ;;  %v846_v3 = vmul.f32 %v845_v8, %v796_v7  ;;  %v875_v22 = vmul.f32 %v874_v21, %v796_v7 }
 0x15b   : > { %1224 = vst.msk [vmem:[%s2283_s3 + $0x28] sm:$0x3f] %vm826_vm2, %v882_v47  ;;  %1231 = vst.msk [vmem:[%s2283_s3 + $0x38] sm:$0x3f] %vm826_vm2, %v911_v49  ;;  %v904_v2 = vmul.f32 %v903_v35, %v796_v7  ;;  %v933_v15 = vmul.f32 %v932_v26, %v796_v7  ;;  %v962_v8 = vmul.f32 %v961_v41, %v796_v7 }
 0x15c   : > { %1238 = vst.msk [vmem:[%s2283_s3 + $0x48] sm:$0x3f] %vm826_vm2, %v940_v51  ;;  %1245 = vst.msk [vmem:[%s2283_s3 + $0x58] sm:$0x3f] %vm826_vm2, %v969_v6  ;;  %v991_v56 = vmul.f32 %v990_v38, %v796_v7  ;;  %v1020_v21 = vmul.f32 %v1019_v11, %v796_v7  ;;  %v818_v60 = vadd.f32 %v816_v42, %v812_v12 }
 0x15d   : > { %1252 = vst.msk [vmem:[%s2283_s3 + $0x68] sm:$0x3f] %vm826_vm2, %v998_v4  ;;  %1259 = vst.msk [vmem:[%s2283_s3 + $0x78] sm:$0x3f] %vm826_vm2, %v1027_v14  ;;  %v848_v35 = vadd.f32 %v846_v3, %v842_v20  ;;  %v877_v28 = vadd.f32 %v875_v22, %v871_v1  ;;  %v906_v23 = vadd.f32 %v904_v2, %v900_v25 }
 0x15e   : > { %v935_v39 = vadd.f32 %v933_v15, %v929_v30  ;;  %v964_v18 = vadd.f32 %v962_v8, %v958_v9  ;;  %v993_v19 = vadd.f32 %v991_v56, %v987_v44  ;;  %v1022_v0 = vadd.f32 %v1020_v21, %v1016_v37 }
 0x15f   : > { %v822_v26 = vadd.f32 %v821_v34, %v818_v60  ;;  %v852_v17 = vadd.f32 %v851_v10, %v848_v35  ;;  %v881_v12 = vadd.f32 %v880_v48, %v877_v28  ;;  %v910_v20 = vadd.f32 %v909_v16, %v906_v23 }
 0x160   : > { %v939_v1 = vadd.f32 %v938_v40, %v935_v39  ;;  %v968_v25 = vadd.f32 %v967_v52, %v964_v18  ;;  %v997_v27 = vadd.f32 %v996_v54, %v993_v19  ;;  %v1026_v30 = vadd.f32 %v1025_v31, %v1022_v0 }
 0x161   : > { %825 = vst.msk [vmem:[%s2283_s3] sm:$0xff] %vm824_vm3, %v822_v26  ;;  %1216 = vst.msk [vmem:[%s2283_s3 + $0x10] sm:$0xff] %vm824_vm3, %v852_v17 }
 0x162   : > { %1223 = vst.msk [vmem:[%s2283_s3 + $0x20] sm:$0xff] %vm824_vm3, %v881_v12  ;;  %1230 = vst.msk [vmem:[%s2283_s3 + $0x30] sm:$0xff] %vm824_vm3, %v910_v20 }
 0x163   : > { %1237 = vst.msk [vmem:[%s2283_s3 + $0x40] sm:$0xff] %vm824_vm3, %v939_v1  ;;  %1244 = vst.msk [vmem:[%s2283_s3 + $0x50] sm:$0xff] %vm824_vm3, %v968_v25 }
 0x164   : > { %1251 = vst.msk [vmem:[%s2283_s3 + $0x60] sm:$0xff] %vm824_vm3, %v997_v27  ;;  %1258 = vst.msk [vmem:[%s2283_s3 + $0x70] sm:$0xff] %vm824_vm3, %v1026_v30 }
 0x165 PF: > { %s19_s20 = sadd.s32 1, %s1487_s20   ;;  %s2395_s18 = sld [smem:[#allocation14_spill]] }
 0x166   : > { %p16_p9 = scmp.ge.s32.totalorder %s19_s20, 4   ;;  %s2396_s19 = sld [smem:[#allocation12_spill]] }
 0x167   : > { %s2397_s24 = sld [smem:[#allocation13_spill]]  ;;  %s2398_s15 = smov %s1471_s16 }
 0x168   : > { %s2399_s16 = smov %s1475_s17  ;;  %18 = sbr.rel (!%p16_p9) target bundleno = 11 (0xb), region = 97 }
 0x16b   : > { %s2400_s17 = smov %s2395_s18 }
 0x16c   : > { %s2401_s18 = smov %s2396_s19 }
 0x16d   : > { %s2402_s19 = smov %s2397_s24 }
 0x16f   :  { %1061 = vsyncpa [#allocation3], 1 }
 0x170   :  { %1063 = vsyncpa [#allocation3 + $0x1], 1 }
 0x171   :  { %1064 = vsyncpa [#allocation4], 1 }
 0x172   :  { %1066 = vsyncpa [#allocation4 + $0x1], 1 }
 0x173   :  { %1067 = vsyncpa [#allocation7], 1 }

</bundles_post_ra>
